<compile_context>
chip_gen: v7x
topology: tpu7x:2x2x1
jax: 0.10.0
libtpu: 0.0.40
codegen_flags: <defaults>
</compile_context>

<pallas_src>
import math

import jax
import jax.numpy as jnp
from jax.experimental import pallas as pl
from jax.experimental.pallas import tpu as pltpu

# ---- scaled-down config (bert-base structure, tiny dims) ----
B, S = 2, 8          # batch, sequence length
D = 32               # embed_dim (encoder hidden size)
H, DH = 2, 16        # attention heads, head dim
FFN = 64             # intermediate size
LAYERS = 2           # encoder layers
VOCAB = 64           # len(tokenizer) after resize (synthetic)
TYPE_VOCAB = 2
MAX_POS = 16
HIDDEN_DIM = 32      # Classifier hidden_dim
TARGET_SIZE = 6      # target_size
DROP_RATE = 0.1      # args.drop_rate
LN_EPS = 1e-12       # BERT LayerNorm eps

_SQRT1_2 = 1.0 / math.sqrt(2.0)


def _erf(x):
    # Abramowitz & Stegun 7.1.26 (|err| < 1.5e-7): f32-accurate erf using only
    # exp/mul/where, so we don't rely on a lax.erf Mosaic lowering.
    a1, a2, a3, a4, a5 = (0.254829592, -0.284496736, 1.421413741,
                          -1.453152027, 1.061405429)
    p = 0.3275911
    ax = jnp.abs(x)
    t = 1.0 / (1.0 + p * ax)
    poly = ((((a5 * t + a4) * t + a3) * t + a2) * t + a1) * t
    y = 1.0 - poly * jnp.exp(-ax * ax)
    return jnp.where(x >= 0.0, y, -y)


def _gelu(x):
    # HF BERT uses exact erf-GELU (not gelu_new/tanh).
    return 0.5 * x * (1.0 + _erf(x * _SQRT1_2))


def _ln(x, gamma, beta):
    mu = jnp.mean(x, axis=-1, keepdims=True)
    var = jnp.mean((x - mu) ** 2, axis=-1, keepdims=True)
    return (x - mu) * jax.lax.rsqrt(var + LN_EPS) * gamma + beta


# ---------------- the single fused Pallas kernel (no grid: one invocation) ----------------

def _fused_forward_kernel(ids_ref, type_ref, mask_ref,
                          word_emb_ref, pos_emb_ref, type_emb_ref, emb_ln_ref,
                          wqkv_ref, bqkv_ref, wo_ref, bo_ref, ln1_ref,
                          wi_ref, bi_ref, wf_ref, bf_ref, ln2_ref,
                          drop_ref, w1_ref, b1_ref, w2_ref, b2_ref,
                          logits_ref):
    rows = B * S

    # --- embeddings folded into the kernel: one-hot (iota compare) + MXU gather ---
    ids = ids_ref[...]                                          # (rows, 1) int32
    word_oh = (jax.lax.broadcasted_iota(jnp.int32, (rows, VOCAB), 1) == ids
               ).astype(jnp.float32)                            # (rows, VOCAB)
    tids = type_ref[...]                                        # (rows, 1) int32
    type_oh = (jax.lax.broadcasted_iota(jnp.int32, (rows, TYPE_VOCAB), 1) == tids
               ).astype(jnp.float32)                            # (rows, TYPE_VOCAB)
    pos_slab = pos_emb_ref[0:S, :]                              # position ids 0..S-1
    pos_full = jnp.concatenate([pos_slab] * B, axis=0)          # (rows, D)

    x = (jnp.dot(word_oh, word_emb_ref[...], preferred_element_type=jnp.float32)
         + jnp.dot(type_oh, type_emb_ref[...], preferred_element_type=jnp.float32)
         + pos_full)
    x = _ln(x, emb_ln_ref[0:1, :], emb_ln_ref[1:2, :])          # (rows, D)

    # --- additive attention-mask bias computed in-kernel from the raw 0/1 mask ---
    bias = (1.0 - mask_ref[...]) * (-1e9)                       # (B, S)

    scale = 1.0 / math.sqrt(DH)

    # --- encoder layers: fully unrolled, all weights VMEM-resident ---
    for layer in range(LAYERS):
        # fused QKV projection: one MXU op instead of three
        qkv = (jnp.dot(x, wqkv_ref[layer], preferred_element_type=jnp.float32)
               + bqkv_ref[layer])                               # (rows, 3D)

        ctx_rows = []
        for b in range(B):
            r0 = b * S
            qkv_b = qkv[r0:r0 + S, :]                           # (S, 3D)
            # hoisted: one broadcast per batch, reused by every head
            bias_b = jnp.broadcast_to(bias[b:b + 1, :], (S, S))
            heads = []
            for h in range(H):
                c0 = h * DH
                q = qkv_b[:, c0:c0 + DH] * scale                # fold 1/sqrt(Dh) into q
                k = qkv_b[:, D + c0:D + c0 + DH]
                v = qkv_b[:, 2 * D + c0:2 * D + c0 + DH]
                s = jax.lax.dot_general(q, k, (((1,), (1,)), ((), ())),
                                        preferred_element_type=jnp.float32) + bias_b
                s = s - jnp.max(s, axis=-1, keepdims=True)
                p = jnp.exp(s)
                # exact division: denominator >= 1 after max-subtraction, so NaN-safe
                # even for fully-masked rows; closer parity with the torch reference.
                p = p / jnp.sum(p, axis=-1, keepdims=True)
                heads.append(jnp.dot(p, v, preferred_element_type=jnp.float32))
            ctx_rows.append(jnp.concatenate(heads, axis=-1))    # (S, D)
        ctx = jnp.concatenate(ctx_rows, axis=0)                 # (rows, D), lane-dense

        attn_out = (jnp.dot(ctx, wo_ref[layer], preferred_element_type=jnp.float32)
                    + bo_ref[layer])
        ln1 = ln1_ref[layer]
        x = _ln(x + attn_out, ln1[0:1, :], ln1[1:2, :])

        inter = _gelu(jnp.dot(x, wi_ref[layer], preferred_element_type=jnp.float32)
                      + bi_ref[layer])
        ffn_out = (jnp.dot(inter, wf_ref[layer], preferred_element_type=jnp.float32)
                   + bf_ref[layer])
        ln2 = ln2_ref[layer]
        x = _ln(x + ffn_out, ln2[0:1, :], ln2[1:2, :])

    # --- CLS gather via one-hot selection matmul (no row-concat XLU shuffles) ---
    sel = (jax.lax.broadcasted_iota(jnp.int32, (B, rows), 1)
           == jax.lax.broadcasted_iota(jnp.int32, (B, rows), 0) * S
           ).astype(jnp.float32)                                # sel[b, r] = (r == b*S)
    cls = jnp.dot(sel, x, preferred_element_type=jnp.float32)   # (B, D)

    # dropout (inverted mask; pass all-ones to reproduce eval mode) + Classifier MLP
    cls = cls * drop_ref[...]
    h1 = jnp.maximum(
        jnp.dot(cls, w1_ref[...], preferred_element_type=jnp.float32) + b1_ref[...],
        0.0)
    logits_ref[...] = (jnp.dot(h1, w2_ref[...], preferred_element_type=jnp.float32)
                       + b2_ref[...])


# ---------------- parameters (deterministic synthetic init, stacked per layer) ----------------

def init_params(key):
    def nrm(k, shape, scale=0.02):
        return (scale * jax.random.normal(k, shape)).astype(jnp.float32)

    keys = iter(jax.random.split(key, 64))
    ones_d = jnp.ones((1, D), jnp.float32)
    zeros_d = jnp.zeros((1, D), jnp.float32)
    ln_init = jnp.concatenate([ones_d, zeros_d], axis=0)   # (2, D) gamma/beta

    wqkv, bqkv, wo, bo, ln1, wi, bi, wf, bf, ln2 = ([] for _ in range(10))
    for _ in range(LAYERS):
        wq = nrm(next(keys), (D, D))
        wk = nrm(next(keys), (D, D))
        wv = nrm(next(keys), (D, D))
        wqkv.append(jnp.concatenate([wq, wk, wv], axis=1))            # (D, 3D) fused QKV
        bqkv.append(jnp.zeros((1, 3 * D), jnp.float32))
        wo.append(nrm(next(keys), (D, D)))
        bo.append(jnp.zeros((1, D), jnp.float32))
        ln1.append(ln_init)
        wi.append(nrm(next(keys), (D, FFN)))
        bi.append(jnp.zeros((1, FFN), jnp.float32))
        wf.append(nrm(next(keys), (FFN, D)))
        bf.append(jnp.zeros((1, D), jnp.float32))
        ln2.append(ln_init)

    return {
        "word_emb": nrm(next(keys), (VOCAB, D)),
        "pos_emb": nrm(next(keys), (MAX_POS, D)),
        "type_emb": nrm(next(keys), (TYPE_VOCAB, D)),
        "emb_ln": ln_init,
        "wqkv": jnp.stack(wqkv), "bqkv": jnp.stack(bqkv),
        "wo": jnp.stack(wo), "bo": jnp.stack(bo), "ln1": jnp.stack(ln1),
        "wi": jnp.stack(wi), "bi": jnp.stack(bi),
        "wf": jnp.stack(wf), "bf": jnp.stack(bf), "ln2": jnp.stack(ln2),
        "cls_w1": nrm(next(keys), (D, HIDDEN_DIM)),
        "cls_b1": jnp.zeros((1, HIDDEN_DIM), jnp.float32),
        "cls_w2": nrm(next(keys), (HIDDEN_DIM, TARGET_SIZE)),
        "cls_b2": jnp.zeros((1, TARGET_SIZE), jnp.float32),
    }


# ---------------- ScenarioModel.forward ----------------

def scenario_model_forward(params, inputs, targets, drop_mask):
    del targets  # forward returns logits; loss is computed outside the module
    input_ids = inputs["input_ids"].astype(jnp.int32).reshape(B * S, 1)
    token_type_ids = inputs["token_type_ids"].astype(jnp.int32).reshape(B * S, 1)
    attention_mask = inputs["attention_mask"].astype(jnp.float32)        # (B, S)

    n_inputs = 22
    vmem_specs = [pl.BlockSpec(memory_space=pltpu.MemorySpace.VMEM)
                  for _ in range(n_inputs)]

    return pl.pallas_call(
        _fused_forward_kernel,
        out_shape=jax.ShapeDtypeStruct((B, TARGET_SIZE), jnp.float32),
        in_specs=vmem_specs,
        out_specs=pl.BlockSpec(memory_space=pltpu.MemorySpace.VMEM),
    )(input_ids, token_type_ids, attention_mask,
      params["word_emb"], params["pos_emb"], params["type_emb"], params["emb_ln"],
      params["wqkv"], params["bqkv"], params["wo"], params["bo"], params["ln1"],
      params["wi"], params["bi"], params["wf"], params["bf"], params["ln2"],
      drop_mask, params["cls_w1"], params["cls_b1"], params["cls_w2"], params["cls_b2"])


if __name__ == "__main__":
    key = jax.random.PRNGKey(0)
    pkey, idkey, dkey, tkey = jax.random.split(key, 4)
    params = init_params(pkey)

    input_ids = jax.random.randint(idkey, (B, S), 0, VOCAB)
    token_type_ids = jnp.zeros((B, S), jnp.int32)
    attention_mask = jnp.ones((B, S), jnp.int32)
    inputs = {"input_ids": input_ids,
              "token_type_ids": token_type_ids,
              "attention_mask": attention_mask}
    targets = jax.random.randint(tkey, (B,), 0, TARGET_SIZE)

    # deterministic inverted-dropout mask (nn.Dropout training-mode semantics);
    # pass jnp.ones((B, D)) to reproduce eval()-mode (dropout == identity).
    keep = jax.random.bernoulli(dkey, 1.0 - DROP_RATE, (B, D))
    drop_mask = keep.astype(jnp.float32) / (1.0 - DROP_RATE)

    logits = jax.jit(scenario_model_forward)(params, inputs, targets, drop_mask)
    jax.block_until_ready(logits)
    assert logits.shape == (B, TARGET_SIZE) and logits.dtype == jnp.float32
    print("KERNEL_OK")
</pallas_src>

<mosaic_0001>
module attributes {stable_mosaic.version = 11 : i64} {
  func.func @_fused_forward_kernel(%arg0: memref<16x1xi32, #tpu.memory_space<vmem>>, %arg1: memref<16x1xi32, #tpu.memory_space<vmem>>, %arg2: memref<2x8xf32, #tpu.memory_space<vmem>>, %arg3: memref<64x32xf32, #tpu.memory_space<vmem>>, %arg4: memref<16x32xf32, #tpu.memory_space<vmem>>, %arg5: memref<2x32xf32, #tpu.memory_space<vmem>>, %arg6: memref<2x32xf32, #tpu.memory_space<vmem>>, %arg7: memref<2x32x96xf32, #tpu.memory_space<vmem>>, %arg8: memref<2x1x96xf32, #tpu.memory_space<vmem>>, %arg9: memref<2x32x32xf32, #tpu.memory_space<vmem>>, %arg10: memref<2x1x32xf32, #tpu.memory_space<vmem>>, %arg11: memref<2x2x32xf32, #tpu.memory_space<vmem>>, %arg12: memref<2x32x64xf32, #tpu.memory_space<vmem>>, %arg13: memref<2x1x64xf32, #tpu.memory_space<vmem>>, %arg14: memref<2x64x32xf32, #tpu.memory_space<vmem>>, %arg15: memref<2x1x32xf32, #tpu.memory_space<vmem>>, %arg16: memref<2x2x32xf32, #tpu.memory_space<vmem>>, %arg17: memref<2x32xf32, #tpu.memory_space<vmem>>, %arg18: memref<32x32xf32, #tpu.memory_space<vmem>>, %arg19: memref<1x32xf32, #tpu.memory_space<vmem>>, %arg20: memref<32x6xf32, #tpu.memory_space<vmem>>, %arg21: memref<1x6xf32, #tpu.memory_space<vmem>>, %arg22: memref<2x6xf32, #tpu.memory_space<vmem>>) attributes {dimension_semantics = [], scalar_prefetch = 0 : i64, scratch_operands = 0 : i64, tpu.core_type = #tpu.core_type<tc>} {
    %c0 = arith.constant 0 : index
    %c0_0 = arith.constant 0 : index
    %0 = vector.load %arg0[%c0, %c0_0] : memref<16x1xi32, #tpu.memory_space<vmem>>, vector<16x1xi32>
    %1 = tpu.iota {dimensions = array<i32: 1>} : vector<16x64xi32>
    %2 = vector.broadcast %0 : vector<16x1xi32> to vector<16x64xi32>
    %3 = arith.cmpi eq, %1, %2 : vector<16x64xi32>
    %4 = arith.extui %3 : vector<16x64xi1> to vector<16x64xi32>
    %5 = arith.sitofp %4 : vector<16x64xi32> to vector<16x64xf32>
    %c0_1 = arith.constant 0 : index
    %c0_2 = arith.constant 0 : index
    %6 = vector.load %arg1[%c0_1, %c0_2] : memref<16x1xi32, #tpu.memory_space<vmem>>, vector<16x1xi32>
    %7 = tpu.iota {dimensions = array<i32: 1>} : vector<16x2xi32>
    %8 = vector.broadcast %6 : vector<16x1xi32> to vector<16x2xi32>
    %9 = arith.cmpi eq, %7, %8 : vector<16x2xi32>
    %10 = arith.extui %9 : vector<16x2xi1> to vector<16x2xi32>
    %11 = arith.sitofp %10 : vector<16x2xi32> to vector<16x2xf32>
    %c0_3 = arith.constant 0 : index
    %c0_4 = arith.constant 0 : index
    %12 = vector.load %arg4[%c0_3, %c0_4] : memref<16x32xf32, #tpu.memory_space<vmem>>, vector<8x32xf32>
    %13 = tpu.concatenate %12, %12 in 0 : vector<8x32xf32>, vector<8x32xf32> -> vector<16x32xf32>
    %c0_5 = arith.constant 0 : index
    %c0_6 = arith.constant 0 : index
    %14 = vector.load %arg3[%c0_5, %c0_6] : memref<64x32xf32, #tpu.memory_space<vmem>>, vector<64x32xf32>
    %cst = arith.constant dense<0.000000e+00> : vector<16x32xf32>
    %15 = tpu.matmul %5, %14, %cst {dimension_numbers = #tpu.dot_dimension_numbers<[1], [0], [0], [1], [0, 0, 1, 1], [], []>} : vector<16x64xf32>, vector<64x32xf32>, vector<16x32xf32> -> vector<16x32xf32>
    %c0_7 = arith.constant 0 : index
    %c0_8 = arith.constant 0 : index
    %16 = vector.load %arg5[%c0_7, %c0_8] : memref<2x32xf32, #tpu.memory_space<vmem>>, vector<2x32xf32>
    %cst_9 = arith.constant dense<0.000000e+00> : vector<16x32xf32>
    %17 = tpu.matmul %11, %16, %cst_9 {dimension_numbers = #tpu.dot_dimension_numbers<[1], [0], [0], [1], [0, 0, 1, 1], [], []>} : vector<16x2xf32>, vector<2x32xf32>, vector<16x32xf32> -> vector<16x32xf32>
    %18 = arith.addf %15, %17 : vector<16x32xf32>
    %19 = arith.addf %18, %13 : vector<16x32xf32>
    %c0_10 = arith.constant 0 : index
    %c0_11 = arith.constant 0 : index
    %20 = vector.load %arg6[%c0_10, %c0_11] : memref<2x32xf32, #tpu.memory_space<vmem>>, vector<1x32xf32>
    %c1 = arith.constant 1 : index
    %c0_12 = arith.constant 0 : index
    %21 = vector.load %arg6[%c1, %c0_12] : memref<2x32xf32, #tpu.memory_space<vmem>>, vector<1x32xf32>
    %cst_13 = arith.constant dense<0.000000e+00> : vector<16xf32>
    %22 = vector.multi_reduction <add>, %19, %cst_13 [1] : vector<16x32xf32> to vector<16xf32>
    %23 = vector.shape_cast %22 : vector<16xf32> to vector<16x1xf32>
    %cst_14 = arith.constant 3.200000e+01 : f32
    %24 = vector.broadcast %cst_14 : f32 to vector<16x1xf32>
    %25 = arith.divf %23, %24 : vector<16x1xf32>
    %26 = vector.broadcast %25 : vector<16x1xf32> to vector<16x32xf32>
    %27 = arith.subf %19, %26 : vector<16x32xf32>
    %28 = arith.mulf %27, %27 : vector<16x32xf32>
    %cst_15 = arith.constant dense<0.000000e+00> : vector<16xf32>
    %29 = vector.multi_reduction <add>, %28, %cst_15 [1] : vector<16x32xf32> to vector<16xf32>
    %30 = vector.shape_cast %29 : vector<16xf32> to vector<16x1xf32>
    %cst_16 = arith.constant 3.200000e+01 : f32
    %31 = vector.broadcast %cst_16 : f32 to vector<16x1xf32>
    %32 = arith.divf %30, %31 : vector<16x1xf32>
    %33 = vector.broadcast %25 : vector<16x1xf32> to vector<16x32xf32>
    %34 = arith.subf %19, %33 : vector<16x32xf32>
    %cst_17 = arith.constant 9.99999996E-13 : f32
    %35 = vector.broadcast %cst_17 : f32 to vector<16x1xf32>
    %36 = arith.addf %32, %35 : vector<16x1xf32>
    %37 = math.rsqrt %36 : vector<16x1xf32>
    %38 = vector.broadcast %37 : vector<16x1xf32> to vector<16x32xf32>
    %39 = arith.mulf %34, %38 : vector<16x32xf32>
    %40 = vector.broadcast %20 : vector<1x32xf32> to vector<16x32xf32>
    %41 = arith.mulf %39, %40 : vector<16x32xf32>
    %42 = vector.broadcast %21 : vector<1x32xf32> to vector<16x32xf32>
    %43 = arith.addf %41, %42 : vector<16x32xf32>
    %c0_18 = arith.constant 0 : index
    %c0_19 = arith.constant 0 : index
    %44 = vector.load %arg2[%c0_18, %c0_19] : memref<2x8xf32, #tpu.memory_space<vmem>>, vector<2x8xf32>
    %cst_20 = arith.constant 1.000000e+00 : f32
    %45 = vector.broadcast %cst_20 : f32 to vector<2x8xf32>
    %46 = arith.subf %45, %44 : vector<2x8xf32>
    %cst_21 = arith.constant -1.000000e+09 : f32
    %47 = vector.broadcast %cst_21 : f32 to vector<2x8xf32>
    %48 = arith.mulf %46, %47 : vector<2x8xf32>
    %c0_22 = arith.constant 0 : index
    %c0_23 = arith.constant 0 : index
    %c0_24 = arith.constant 0 : index
    %49 = vector.load %arg7[%c0_22, %c0_23, %c0_24] : memref<2x32x96xf32, #tpu.memory_space<vmem>>, vector<1x32x96xf32>
    %50 = vector.shape_cast %49 : vector<1x32x96xf32> to vector<32x96xf32>
    %cst_25 = arith.constant dense<0.000000e+00> : vector<16x96xf32>
    %51 = tpu.matmul %43, %50, %cst_25 {dimension_numbers = #tpu.dot_dimension_numbers<[1], [0], [0], [1], [0, 0, 1, 1], [], []>} : vector<16x32xf32>, vector<32x96xf32>, vector<16x96xf32> -> vector<16x96xf32>
    %c0_26 = arith.constant 0 : index
    %c0_27 = arith.constant 0 : index
    %c0_28 = arith.constant 0 : index
    %52 = vector.load %arg8[%c0_26, %c0_27, %c0_28] : memref<2x1x96xf32, #tpu.memory_space<vmem>>, vector<1x1x96xf32>
    %53 = vector.shape_cast %52 : vector<1x1x96xf32> to vector<1x96xf32>
    %54 = vector.broadcast %53 : vector<1x96xf32> to vector<16x96xf32>
    %55 = arith.addf %51, %54 : vector<16x96xf32>
    %56 = vector.extract_strided_slice %55 {offsets = [0, 0], sizes = [8, 96], strides = [1, 1]} : vector<16x96xf32> to vector<8x96xf32>
    %57 = vector.extract_strided_slice %48 {offsets = [0, 0], sizes = [1, 8], strides = [1, 1]} : vector<2x8xf32> to vector<1x8xf32>
    %58 = vector.shape_cast %57 : vector<1x8xf32> to vector<1x8xf32>
    %59 = vector.broadcast %58 : vector<1x8xf32> to vector<8x8xf32>
    %60 = vector.extract_strided_slice %56 {offsets = [0, 0], sizes = [8, 16], strides = [1, 1]} : vector<8x96xf32> to vector<8x16xf32>
    %cst_29 = arith.constant 2.500000e-01 : f32
    %61 = vector.broadcast %cst_29 : f32 to vector<8x16xf32>
    %62 = arith.mulf %60, %61 : vector<8x16xf32>
    %63 = vector.extract_strided_slice %56 {offsets = [0, 32], sizes = [8, 16], strides = [1, 1]} : vector<8x96xf32> to vector<8x16xf32>
    %64 = vector.extract_strided_slice %56 {offsets = [0, 64], sizes = [8, 16], strides = [1, 1]} : vector<8x96xf32> to vector<8x16xf32>
    %cst_30 = arith.constant dense<0.000000e+00> : vector<8x8xf32>
    %65 = tpu.matmul %62, %63, %cst_30 {dimension_numbers = #tpu.dot_dimension_numbers<[1], [1], [0], [0], [0, 0, 1, 0], [], []>} : vector<8x16xf32>, vector<8x16xf32>, vector<8x8xf32> -> vector<8x8xf32>
    %66 = arith.addf %65, %59 : vector<8x8xf32>
    %cst_31 = arith.constant dense<0xFF800000> : vector<8xf32>
    %67 = vector.multi_reduction <maximumf>, %66, %cst_31 [1] : vector<8x8xf32> to vector<8xf32>
    %68 = vector.shape_cast %67 : vector<8xf32> to vector<8x1xf32>
    %69 = vector.broadcast %68 : vector<8x1xf32> to vector<8x8xf32>
    %70 = arith.subf %66, %69 : vector<8x8xf32>
    %71 = math.exp %70 : vector<8x8xf32>
    %cst_32 = arith.constant dense<0.000000e+00> : vector<8xf32>
    %72 = vector.multi_reduction <add>, %71, %cst_32 [1] : vector<8x8xf32> to vector<8xf32>
    %73 = vector.shape_cast %72 : vector<8xf32> to vector<8x1xf32>
    %74 = vector.broadcast %73 : vector<8x1xf32> to vector<8x8xf32>
    %75 = arith.divf %71, %74 : vector<8x8xf32>
    %cst_33 = arith.constant dense<0.000000e+00> : vector<8x16xf32>
    %76 = tpu.matmul %75, %64, %cst_33 {dimension_numbers = #tpu.dot_dimension_numbers<[1], [0], [0], [1], [0, 0, 1, 1], [], []>} : vector<8x8xf32>, vector<8x16xf32>, vector<8x16xf32> -> vector<8x16xf32>
    %77 = vector.extract_strided_slice %56 {offsets = [0, 16], sizes = [8, 16], strides = [1, 1]} : vector<8x96xf32> to vector<8x16xf32>
    %cst_34 = arith.constant 2.500000e-01 : f32
    %78 = vector.broadcast %cst_34 : f32 to vector<8x16xf32>
    %79 = arith.mulf %77, %78 : vector<8x16xf32>
    %80 = vector.extract_strided_slice %56 {offsets = [0, 48], sizes = [8, 16], strides = [1, 1]} : vector<8x96xf32> to vector<8x16xf32>
    %81 = vector.extract_strided_slice %56 {offsets = [0, 80], sizes = [8, 16], strides = [1, 1]} : vector<8x96xf32> to vector<8x16xf32>
    %cst_35 = arith.constant dense<0.000000e+00> : vector<8x8xf32>
    %82 = tpu.matmul %79, %80, %cst_35 {dimension_numbers = #tpu.dot_dimension_numbers<[1], [1], [0], [0], [0, 0, 1, 0], [], []>} : vector<8x16xf32>, vector<8x16xf32>, vector<8x8xf32> -> vector<8x8xf32>
    %83 = arith.addf %82, %59 : vector<8x8xf32>
    %cst_36 = arith.constant dense<0xFF800000> : vector<8xf32>
    %84 = vector.multi_reduction <maximumf>, %83, %cst_36 [1] : vector<8x8xf32> to vector<8xf32>
    %85 = vector.shape_cast %84 : vector<8xf32> to vector<8x1xf32>
    %86 = vector.broadcast %85 : vector<8x1xf32> to vector<8x8xf32>
    %87 = arith.subf %83, %86 : vector<8x8xf32>
    %88 = math.exp %87 : vector<8x8xf32>
    %cst_37 = arith.constant dense<0.000000e+00> : vector<8xf32>
    %89 = vector.multi_reduction <add>, %88, %cst_37 [1] : vector<8x8xf32> to vector<8xf32>
    %90 = vector.shape_cast %89 : vector<8xf32> to vector<8x1xf32>
    %91 = vector.broadcast %90 : vector<8x1xf32> to vector<8x8xf32>
    %92 = arith.divf %88, %91 : vector<8x8xf32>
    %cst_38 = arith.constant dense<0.000000e+00> : vector<8x16xf32>
    %93 = tpu.matmul %92, %81, %cst_38 {dimension_numbers = #tpu.dot_dimension_numbers<[1], [0], [0], [1], [0, 0, 1, 1], [], []>} : vector<8x8xf32>, vector<8x16xf32>, vector<8x16xf32> -> vector<8x16xf32>
    %94 = tpu.concatenate %76, %93 in 1 : vector<8x16xf32>, vector<8x16xf32> -> vector<8x32xf32>
    %95 = vector.extract_strided_slice %55 {offsets = [8, 0], sizes = [8, 96], strides = [1, 1]} : vector<16x96xf32> to vector<8x96xf32>
    %96 = vector.extract_strided_slice %48 {offsets = [1, 0], sizes = [1, 8], strides = [1, 1]} : vector<2x8xf32> to vector<1x8xf32>
    %97 = vector.shape_cast %96 : vector<1x8xf32> to vector<1x8xf32>
    %98 = vector.broadcast %97 : vector<1x8xf32> to vector<8x8xf32>
    %99 = vector.extract_strided_slice %95 {offsets = [0, 0], sizes = [8, 16], strides = [1, 1]} : vector<8x96xf32> to vector<8x16xf32>
    %cst_39 = arith.constant 2.500000e-01 : f32
    %100 = vector.broadcast %cst_39 : f32 to vector<8x16xf32>
    %101 = arith.mulf %99, %100 : vector<8x16xf32>
    %102 = vector.extract_strided_slice %95 {offsets = [0, 32], sizes = [8, 16], strides = [1, 1]} : vector<8x96xf32> to vector<8x16xf32>
    %103 = vector.extract_strided_slice %95 {offsets = [0, 64], sizes = [8, 16], strides = [1, 1]} : vector<8x96xf32> to vector<8x16xf32>
    %cst_40 = arith.constant dense<0.000000e+00> : vector<8x8xf32>
    %104 = tpu.matmul %101, %102, %cst_40 {dimension_numbers = #tpu.dot_dimension_numbers<[1], [1], [0], [0], [0, 0, 1, 0], [], []>} : vector<8x16xf32>, vector<8x16xf32>, vector<8x8xf32> -> vector<8x8xf32>
    %105 = arith.addf %104, %98 : vector<8x8xf32>
    %cst_41 = arith.constant dense<0xFF800000> : vector<8xf32>
    %106 = vector.multi_reduction <maximumf>, %105, %cst_41 [1] : vector<8x8xf32> to vector<8xf32>
    %107 = vector.shape_cast %106 : vector<8xf32> to vector<8x1xf32>
    %108 = vector.broadcast %107 : vector<8x1xf32> to vector<8x8xf32>
    %109 = arith.subf %105, %108 : vector<8x8xf32>
    %110 = math.exp %109 : vector<8x8xf32>
    %cst_42 = arith.constant dense<0.000000e+00> : vector<8xf32>
    %111 = vector.multi_reduction <add>, %110, %cst_42 [1] : vector<8x8xf32> to vector<8xf32>
    %112 = vector.shape_cast %111 : vector<8xf32> to vector<8x1xf32>
    %113 = vector.broadcast %112 : vector<8x1xf32> to vector<8x8xf32>
    %114 = arith.divf %110, %113 : vector<8x8xf32>
    %cst_43 = arith.constant dense<0.000000e+00> : vector<8x16xf32>
    %115 = tpu.matmul %114, %103, %cst_43 {dimension_numbers = #tpu.dot_dimension_numbers<[1], [0], [0], [1], [0, 0, 1, 1], [], []>} : vector<8x8xf32>, vector<8x16xf32>, vector<8x16xf32> -> vector<8x16xf32>
    %116 = vector.extract_strided_slice %95 {offsets = [0, 16], sizes = [8, 16], strides = [1, 1]} : vector<8x96xf32> to vector<8x16xf32>
    %cst_44 = arith.constant 2.500000e-01 : f32
    %117 = vector.broadcast %cst_44 : f32 to vector<8x16xf32>
    %118 = arith.mulf %116, %117 : vector<8x16xf32>
    %119 = vector.extract_strided_slice %95 {offsets = [0, 48], sizes = [8, 16], strides = [1, 1]} : vector<8x96xf32> to vector<8x16xf32>
    %120 = vector.extract_strided_slice %95 {offsets = [0, 80], sizes = [8, 16], strides = [1, 1]} : vector<8x96xf32> to vector<8x16xf32>
    %cst_45 = arith.constant dense<0.000000e+00> : vector<8x8xf32>
    %121 = tpu.matmul %118, %119, %cst_45 {dimension_numbers = #tpu.dot_dimension_numbers<[1], [1], [0], [0], [0, 0, 1, 0], [], []>} : vector<8x16xf32>, vector<8x16xf32>, vector<8x8xf32> -> vector<8x8xf32>
    %122 = arith.addf %121, %98 : vector<8x8xf32>
    %cst_46 = arith.constant dense<0xFF800000> : vector<8xf32>
    %123 = vector.multi_reduction <maximumf>, %122, %cst_46 [1] : vector<8x8xf32> to vector<8xf32>
    %124 = vector.shape_cast %123 : vector<8xf32> to vector<8x1xf32>
    %125 = vector.broadcast %124 : vector<8x1xf32> to vector<8x8xf32>
    %126 = arith.subf %122, %125 : vector<8x8xf32>
    %127 = math.exp %126 : vector<8x8xf32>
    %cst_47 = arith.constant dense<0.000000e+00> : vector<8xf32>
    %128 = vector.multi_reduction <add>, %127, %cst_47 [1] : vector<8x8xf32> to vector<8xf32>
    %129 = vector.shape_cast %128 : vector<8xf32> to vector<8x1xf32>
    %130 = vector.broadcast %129 : vector<8x1xf32> to vector<8x8xf32>
    %131 = arith.divf %127, %130 : vector<8x8xf32>
    %cst_48 = arith.constant dense<0.000000e+00> : vector<8x16xf32>
    %132 = tpu.matmul %131, %120, %cst_48 {dimension_numbers = #tpu.dot_dimension_numbers<[1], [0], [0], [1], [0, 0, 1, 1], [], []>} : vector<8x8xf32>, vector<8x16xf32>, vector<8x16xf32> -> vector<8x16xf32>
    %133 = tpu.concatenate %115, %132 in 1 : vector<8x16xf32>, vector<8x16xf32> -> vector<8x32xf32>
    %134 = tpu.concatenate %94, %133 in 0 : vector<8x32xf32>, vector<8x32xf32> -> vector<16x32xf32>
    %c0_49 = arith.constant 0 : index
    %c0_50 = arith.constant 0 : index
    %c0_51 = arith.constant 0 : index
    %135 = vector.load %arg9[%c0_49, %c0_50, %c0_51] : memref<2x32x32xf32, #tpu.memory_space<vmem>>, vector<1x32x32xf32>
    %136 = vector.shape_cast %135 : vector<1x32x32xf32> to vector<32x32xf32>
    %cst_52 = arith.constant dense<0.000000e+00> : vector<16x32xf32>
    %137 = tpu.matmul %134, %136, %cst_52 {dimension_numbers = #tpu.dot_dimension_numbers<[1], [0], [0], [1], [0, 0, 1, 1], [], []>} : vector<16x32xf32>, vector<32x32xf32>, vector<16x32xf32> -> vector<16x32xf32>
    %c0_53 = arith.constant 0 : index
    %c0_54 = arith.constant 0 : index
    %c0_55 = arith.constant 0 : index
    %138 = vector.load %arg10[%c0_53, %c0_54, %c0_55] : memref<2x1x32xf32, #tpu.memory_space<vmem>>, vector<1x1x32xf32>
    %139 = vector.shape_cast %138 : vector<1x1x32xf32> to vector<1x32xf32>
    %140 = vector.broadcast %139 : vector<1x32xf32> to vector<16x32xf32>
    %141 = arith.addf %137, %140 : vector<16x32xf32>
    %c0_56 = arith.constant 0 : index
    %c0_57 = arith.constant 0 : index
    %c0_58 = arith.constant 0 : index
    %142 = vector.load %arg11[%c0_56, %c0_57, %c0_58] : memref<2x2x32xf32, #tpu.memory_space<vmem>>, vector<1x2x32xf32>
    %143 = vector.shape_cast %142 : vector<1x2x32xf32> to vector<2x32xf32>
    %144 = arith.addf %43, %141 : vector<16x32xf32>
    %145 = vector.extract_strided_slice %143 {offsets = [0, 0], sizes = [1, 32], strides = [1, 1]} : vector<2x32xf32> to vector<1x32xf32>
    %146 = vector.extract_strided_slice %143 {offsets = [1, 0], sizes = [1, 32], strides = [1, 1]} : vector<2x32xf32> to vector<1x32xf32>
    %cst_59 = arith.constant dense<0.000000e+00> : vector<16xf32>
    %147 = vector.multi_reduction <add>, %144, %cst_59 [1] : vector<16x32xf32> to vector<16xf32>
    %148 = vector.shape_cast %147 : vector<16xf32> to vector<16x1xf32>
    %cst_60 = arith.constant 3.200000e+01 : f32
    %149 = vector.broadcast %cst_60 : f32 to vector<16x1xf32>
    %150 = arith.divf %148, %149 : vector<16x1xf32>
    %151 = vector.broadcast %150 : vector<16x1xf32> to vector<16x32xf32>
    %152 = arith.subf %144, %151 : vector<16x32xf32>
    %153 = arith.mulf %152, %152 : vector<16x32xf32>
    %cst_61 = arith.constant dense<0.000000e+00> : vector<16xf32>
    %154 = vector.multi_reduction <add>, %153, %cst_61 [1] : vector<16x32xf32> to vector<16xf32>
    %155 = vector.shape_cast %154 : vector<16xf32> to vector<16x1xf32>
    %cst_62 = arith.constant 3.200000e+01 : f32
    %156 = vector.broadcast %cst_62 : f32 to vector<16x1xf32>
    %157 = arith.divf %155, %156 : vector<16x1xf32>
    %158 = vector.broadcast %150 : vector<16x1xf32> to vector<16x32xf32>
    %159 = arith.subf %144, %158 : vector<16x32xf32>
    %cst_63 = arith.constant 9.99999996E-13 : f32
    %160 = vector.broadcast %cst_63 : f32 to vector<16x1xf32>
    %161 = arith.addf %157, %160 : vector<16x1xf32>
    %162 = math.rsqrt %161 : vector<16x1xf32>
    %163 = vector.broadcast %162 : vector<16x1xf32> to vector<16x32xf32>
    %164 = arith.mulf %159, %163 : vector<16x32xf32>
    %165 = vector.broadcast %145 : vector<1x32xf32> to vector<16x32xf32>
    %166 = arith.mulf %164, %165 : vector<16x32xf32>
    %167 = vector.broadcast %146 : vector<1x32xf32> to vector<16x32xf32>
    %168 = arith.addf %166, %167 : vector<16x32xf32>
    %c0_64 = arith.constant 0 : index
    %c0_65 = arith.constant 0 : index
    %c0_66 = arith.constant 0 : index
    %169 = vector.load %arg12[%c0_64, %c0_65, %c0_66] : memref<2x32x64xf32, #tpu.memory_space<vmem>>, vector<1x32x64xf32>
    %170 = vector.shape_cast %169 : vector<1x32x64xf32> to vector<32x64xf32>
    %cst_67 = arith.constant dense<0.000000e+00> : vector<16x64xf32>
    %171 = tpu.matmul %168, %170, %cst_67 {dimension_numbers = #tpu.dot_dimension_numbers<[1], [0], [0], [1], [0, 0, 1, 1], [], []>} : vector<16x32xf32>, vector<32x64xf32>, vector<16x64xf32> -> vector<16x64xf32>
    %c0_68 = arith.constant 0 : index
    %c0_69 = arith.constant 0 : index
    %c0_70 = arith.constant 0 : index
    %172 = vector.load %arg13[%c0_68, %c0_69, %c0_70] : memref<2x1x64xf32, #tpu.memory_space<vmem>>, vector<1x1x64xf32>
    %173 = vector.shape_cast %172 : vector<1x1x64xf32> to vector<1x64xf32>
    %174 = vector.broadcast %173 : vector<1x64xf32> to vector<16x64xf32>
    %175 = arith.addf %171, %174 : vector<16x64xf32>
    %cst_71 = arith.constant 5.000000e-01 : f32
    %176 = vector.broadcast %cst_71 : f32 to vector<16x64xf32>
    %177 = arith.mulf %176, %175 : vector<16x64xf32>
    %cst_72 = arith.constant 0.707106769 : f32
    %178 = vector.broadcast %cst_72 : f32 to vector<16x64xf32>
    %179 = arith.mulf %175, %178 : vector<16x64xf32>
    %180 = math.absf %179 : vector<16x64xf32>
    %cst_73 = arith.constant 0.327591091 : f32
    %181 = vector.broadcast %cst_73 : f32 to vector<16x64xf32>
    %182 = arith.mulf %181, %180 : vector<16x64xf32>
    %cst_74 = arith.constant 1.000000e+00 : f32
    %183 = vector.broadcast %cst_74 : f32 to vector<16x64xf32>
    %184 = arith.addf %183, %182 : vector<16x64xf32>
    %cst_75 = arith.constant 1.000000e+00 : f32
    %185 = vector.broadcast %cst_75 : f32 to vector<16x64xf32>
    %186 = arith.divf %185, %184 : vector<16x64xf32>
    %cst_76 = arith.constant 1.06140542 : f32
    %187 = vector.broadcast %cst_76 : f32 to vector<16x64xf32>
    %188 = arith.mulf %187, %186 : vector<16x64xf32>
    %cst_77 = arith.constant -1.45315206 : f32
    %189 = vector.broadcast %cst_77 : f32 to vector<16x64xf32>
    %190 = arith.addf %188, %189 : vector<16x64xf32>
    %191 = arith.mulf %190, %186 : vector<16x64xf32>
    %cst_78 = arith.constant 1.42141378 : f32
    %192 = vector.broadcast %cst_78 : f32 to vector<16x64xf32>
    %193 = arith.addf %191, %192 : vector<16x64xf32>
    %194 = arith.mulf %193, %186 : vector<16x64xf32>
    %cst_79 = arith.constant -0.284496725 : f32
    %195 = vector.broadcast %cst_79 : f32 to vector<16x64xf32>
    %196 = arith.addf %194, %195 : vector<16x64xf32>
    %197 = arith.mulf %196, %186 : vector<16x64xf32>
    %cst_80 = arith.constant 0.254829586 : f32
    %198 = vector.broadcast %cst_80 : f32 to vector<16x64xf32>
    %199 = arith.addf %197, %198 : vector<16x64xf32>
    %200 = arith.mulf %199, %186 : vector<16x64xf32>
    %cst_81 = arith.constant 0.000000e+00 : f32
    %201 = vector.broadcast %cst_81 : f32 to vector<16x64xf32>
    %202 = arith.subf %201, %180 : vector<16x64xf32>
    %203 = arith.mulf %202, %180 : vector<16x64xf32>
    %204 = math.exp %203 : vector<16x64xf32>
    %205 = arith.mulf %200, %204 : vector<16x64xf32>
    %cst_82 = arith.constant 1.000000e+00 : f32
    %206 = vector.broadcast %cst_82 : f32 to vector<16x64xf32>
    %207 = arith.subf %206, %205 : vector<16x64xf32>
    %cst_83 = arith.constant 0.000000e+00 : f32
    %208 = vector.broadcast %cst_83 : f32 to vector<16x64xf32>
    %209 = arith.cmpf oge, %179, %208 : vector<16x64xf32>
    %cst_84 = arith.constant 0.000000e+00 : f32
    %210 = vector.broadcast %cst_84 : f32 to vector<16x64xf32>
    %211 = arith.subf %210, %207 : vector<16x64xf32>
    %212 = arith.select %209, %207, %211 : vector<16x64xi1>, vector<16x64xf32>
    %cst_85 = arith.constant 1.000000e+00 : f32
    %213 = vector.broadcast %cst_85 : f32 to vector<16x64xf32>
    %214 = arith.addf %213, %212 : vector<16x64xf32>
    %215 = arith.mulf %177, %214 : vector<16x64xf32>
    %c0_86 = arith.constant 0 : index
    %c0_87 = arith.constant 0 : index
    %c0_88 = arith.constant 0 : index
    %216 = vector.load %arg14[%c0_86, %c0_87, %c0_88] : memref<2x64x32xf32, #tpu.memory_space<vmem>>, vector<1x64x32xf32>
    %217 = vector.shape_cast %216 : vector<1x64x32xf32> to vector<64x32xf32>
    %cst_89 = arith.constant dense<0.000000e+00> : vector<16x32xf32>
    %218 = tpu.matmul %215, %217, %cst_89 {dimension_numbers = #tpu.dot_dimension_numbers<[1], [0], [0], [1], [0, 0, 1, 1], [], []>} : vector<16x64xf32>, vector<64x32xf32>, vector<16x32xf32> -> vector<16x32xf32>
    %c0_90 = arith.constant 0 : index
    %c0_91 = arith.constant 0 : index
    %c0_92 = arith.constant 0 : index
    %219 = vector.load %arg15[%c0_90, %c0_91, %c0_92] : memref<2x1x32xf32, #tpu.memory_space<vmem>>, vector<1x1x32xf32>
    %220 = vector.shape_cast %219 : vector<1x1x32xf32> to vector<1x32xf32>
    %221 = vector.broadcast %220 : vector<1x32xf32> to vector<16x32xf32>
    %222 = arith.addf %218, %221 : vector<16x32xf32>
    %c0_93 = arith.constant 0 : index
    %c0_94 = arith.constant 0 : index
    %c0_95 = arith.constant 0 : index
    %223 = vector.load %arg16[%c0_93, %c0_94, %c0_95] : memref<2x2x32xf32, #tpu.memory_space<vmem>>, vector<1x2x32xf32>
    %224 = vector.shape_cast %223 : vector<1x2x32xf32> to vector<2x32xf32>
    %225 = arith.addf %168, %222 : vector<16x32xf32>
    %226 = vector.extract_strided_slice %224 {offsets = [0, 0], sizes = [1, 32], strides = [1, 1]} : vector<2x32xf32> to vector<1x32xf32>
    %227 = vector.extract_strided_slice %224 {offsets = [1, 0], sizes = [1, 32], strides = [1, 1]} : vector<2x32xf32> to vector<1x32xf32>
    %cst_96 = arith.constant dense<0.000000e+00> : vector<16xf32>
    %228 = vector.multi_reduction <add>, %225, %cst_96 [1] : vector<16x32xf32> to vector<16xf32>
    %229 = vector.shape_cast %228 : vector<16xf32> to vector<16x1xf32>
    %cst_97 = arith.constant 3.200000e+01 : f32
    %230 = vector.broadcast %cst_97 : f32 to vector<16x1xf32>
    %231 = arith.divf %229, %230 : vector<16x1xf32>
    %232 = vector.broadcast %231 : vector<16x1xf32> to vector<16x32xf32>
    %233 = arith.subf %225, %232 : vector<16x32xf32>
    %234 = arith.mulf %233, %233 : vector<16x32xf32>
    %cst_98 = arith.constant dense<0.000000e+00> : vector<16xf32>
    %235 = vector.multi_reduction <add>, %234, %cst_98 [1] : vector<16x32xf32> to vector<16xf32>
    %236 = vector.shape_cast %235 : vector<16xf32> to vector<16x1xf32>
    %cst_99 = arith.constant 3.200000e+01 : f32
    %237 = vector.broadcast %cst_99 : f32 to vector<16x1xf32>
    %238 = arith.divf %236, %237 : vector<16x1xf32>
    %239 = vector.broadcast %231 : vector<16x1xf32> to vector<16x32xf32>
    %240 = arith.subf %225, %239 : vector<16x32xf32>
    %cst_100 = arith.constant 9.99999996E-13 : f32
    %241 = vector.broadcast %cst_100 : f32 to vector<16x1xf32>
    %242 = arith.addf %238, %241 : vector<16x1xf32>
    %243 = math.rsqrt %242 : vector<16x1xf32>
    %244 = vector.broadcast %243 : vector<16x1xf32> to vector<16x32xf32>
    %245 = arith.mulf %240, %244 : vector<16x32xf32>
    %246 = vector.broadcast %226 : vector<1x32xf32> to vector<16x32xf32>
    %247 = arith.mulf %245, %246 : vector<16x32xf32>
    %248 = vector.broadcast %227 : vector<1x32xf32> to vector<16x32xf32>
    %249 = arith.addf %247, %248 : vector<16x32xf32>
    %c1_101 = arith.constant 1 : index
    %c0_102 = arith.constant 0 : index
    %c0_103 = arith.constant 0 : index
    %250 = vector.load %arg7[%c1_101, %c0_102, %c0_103] : memref<2x32x96xf32, #tpu.memory_space<vmem>>, vector<1x32x96xf32>
    %251 = vector.shape_cast %250 : vector<1x32x96xf32> to vector<32x96xf32>
    %cst_104 = arith.constant dense<0.000000e+00> : vector<16x96xf32>
    %252 = tpu.matmul %249, %251, %cst_104 {dimension_numbers = #tpu.dot_dimension_numbers<[1], [0], [0], [1], [0, 0, 1, 1], [], []>} : vector<16x32xf32>, vector<32x96xf32>, vector<16x96xf32> -> vector<16x96xf32>
    %c1_105 = arith.constant 1 : index
    %c0_106 = arith.constant 0 : index
    %c0_107 = arith.constant 0 : index
    %253 = vector.load %arg8[%c1_105, %c0_106, %c0_107] : memref<2x1x96xf32, #tpu.memory_space<vmem>>, vector<1x1x96xf32>
    %254 = vector.shape_cast %253 : vector<1x1x96xf32> to vector<1x96xf32>
    %255 = vector.broadcast %254 : vector<1x96xf32> to vector<16x96xf32>
    %256 = arith.addf %252, %255 : vector<16x96xf32>
    %257 = vector.extract_strided_slice %256 {offsets = [0, 0], sizes = [8, 96], strides = [1, 1]} : vector<16x96xf32> to vector<8x96xf32>
    %258 = vector.extract_strided_slice %48 {offsets = [0, 0], sizes = [1, 8], strides = [1, 1]} : vector<2x8xf32> to vector<1x8xf32>
    %259 = vector.shape_cast %258 : vector<1x8xf32> to vector<1x8xf32>
    %260 = vector.broadcast %259 : vector<1x8xf32> to vector<8x8xf32>
    %261 = vector.extract_strided_slice %257 {offsets = [0, 0], sizes = [8, 16], strides = [1, 1]} : vector<8x96xf32> to vector<8x16xf32>
    %cst_108 = arith.constant 2.500000e-01 : f32
    %262 = vector.broadcast %cst_108 : f32 to vector<8x16xf32>
    %263 = arith.mulf %261, %262 : vector<8x16xf32>
    %264 = vector.extract_strided_slice %257 {offsets = [0, 32], sizes = [8, 16], strides = [1, 1]} : vector<8x96xf32> to vector<8x16xf32>
    %265 = vector.extract_strided_slice %257 {offsets = [0, 64], sizes = [8, 16], strides = [1, 1]} : vector<8x96xf32> to vector<8x16xf32>
    %cst_109 = arith.constant dense<0.000000e+00> : vector<8x8xf32>
    %266 = tpu.matmul %263, %264, %cst_109 {dimension_numbers = #tpu.dot_dimension_numbers<[1], [1], [0], [0], [0, 0, 1, 0], [], []>} : vector<8x16xf32>, vector<8x16xf32>, vector<8x8xf32> -> vector<8x8xf32>
    %267 = arith.addf %266, %260 : vector<8x8xf32>
    %cst_110 = arith.constant dense<0xFF800000> : vector<8xf32>
    %268 = vector.multi_reduction <maximumf>, %267, %cst_110 [1] : vector<8x8xf32> to vector<8xf32>
    %269 = vector.shape_cast %268 : vector<8xf32> to vector<8x1xf32>
    %270 = vector.broadcast %269 : vector<8x1xf32> to vector<8x8xf32>
    %271 = arith.subf %267, %270 : vector<8x8xf32>
    %272 = math.exp %271 : vector<8x8xf32>
    %cst_111 = arith.constant dense<0.000000e+00> : vector<8xf32>
    %273 = vector.multi_reduction <add>, %272, %cst_111 [1] : vector<8x8xf32> to vector<8xf32>
    %274 = vector.shape_cast %273 : vector<8xf32> to vector<8x1xf32>
    %275 = vector.broadcast %274 : vector<8x1xf32> to vector<8x8xf32>
    %276 = arith.divf %272, %275 : vector<8x8xf32>
    %cst_112 = arith.constant dense<0.000000e+00> : vector<8x16xf32>
    %277 = tpu.matmul %276, %265, %cst_112 {dimension_numbers = #tpu.dot_dimension_numbers<[1], [0], [0], [1], [0, 0, 1, 1], [], []>} : vector<8x8xf32>, vector<8x16xf32>, vector<8x16xf32> -> vector<8x16xf32>
    %278 = vector.extract_strided_slice %257 {offsets = [0, 16], sizes = [8, 16], strides = [1, 1]} : vector<8x96xf32> to vector<8x16xf32>
    %cst_113 = arith.constant 2.500000e-01 : f32
    %279 = vector.broadcast %cst_113 : f32 to vector<8x16xf32>
    %280 = arith.mulf %278, %279 : vector<8x16xf32>
    %281 = vector.extract_strided_slice %257 {offsets = [0, 48], sizes = [8, 16], strides = [1, 1]} : vector<8x96xf32> to vector<8x16xf32>
    %282 = vector.extract_strided_slice %257 {offsets = [0, 80], sizes = [8, 16], strides = [1, 1]} : vector<8x96xf32> to vector<8x16xf32>
    %cst_114 = arith.constant dense<0.000000e+00> : vector<8x8xf32>
    %283 = tpu.matmul %280, %281, %cst_114 {dimension_numbers = #tpu.dot_dimension_numbers<[1], [1], [0], [0], [0, 0, 1, 0], [], []>} : vector<8x16xf32>, vector<8x16xf32>, vector<8x8xf32> -> vector<8x8xf32>
    %284 = arith.addf %283, %260 : vector<8x8xf32>
    %cst_115 = arith.constant dense<0xFF800000> : vector<8xf32>
    %285 = vector.multi_reduction <maximumf>, %284, %cst_115 [1] : vector<8x8xf32> to vector<8xf32>
    %286 = vector.shape_cast %285 : vector<8xf32> to vector<8x1xf32>
    %287 = vector.broadcast %286 : vector<8x1xf32> to vector<8x8xf32>
    %288 = arith.subf %284, %287 : vector<8x8xf32>
    %289 = math.exp %288 : vector<8x8xf32>
    %cst_116 = arith.constant dense<0.000000e+00> : vector<8xf32>
    %290 = vector.multi_reduction <add>, %289, %cst_116 [1] : vector<8x8xf32> to vector<8xf32>
    %291 = vector.shape_cast %290 : vector<8xf32> to vector<8x1xf32>
    %292 = vector.broadcast %291 : vector<8x1xf32> to vector<8x8xf32>
    %293 = arith.divf %289, %292 : vector<8x8xf32>
    %cst_117 = arith.constant dense<0.000000e+00> : vector<8x16xf32>
    %294 = tpu.matmul %293, %282, %cst_117 {dimension_numbers = #tpu.dot_dimension_numbers<[1], [0], [0], [1], [0, 0, 1, 1], [], []>} : vector<8x8xf32>, vector<8x16xf32>, vector<8x16xf32> -> vector<8x16xf32>
    %295 = tpu.concatenate %277, %294 in 1 : vector<8x16xf32>, vector<8x16xf32> -> vector<8x32xf32>
    %296 = vector.extract_strided_slice %256 {offsets = [8, 0], sizes = [8, 96], strides = [1, 1]} : vector<16x96xf32> to vector<8x96xf32>
    %297 = vector.extract_strided_slice %48 {offsets = [1, 0], sizes = [1, 8], strides = [1, 1]} : vector<2x8xf32> to vector<1x8xf32>
    %298 = vector.shape_cast %297 : vector<1x8xf32> to vector<1x8xf32>
    %299 = vector.broadcast %298 : vector<1x8xf32> to vector<8x8xf32>
    %300 = vector.extract_strided_slice %296 {offsets = [0, 0], sizes = [8, 16], strides = [1, 1]} : vector<8x96xf32> to vector<8x16xf32>
    %cst_118 = arith.constant 2.500000e-01 : f32
    %301 = vector.broadcast %cst_118 : f32 to vector<8x16xf32>
    %302 = arith.mulf %300, %301 : vector<8x16xf32>
    %303 = vector.extract_strided_slice %296 {offsets = [0, 32], sizes = [8, 16], strides = [1, 1]} : vector<8x96xf32> to vector<8x16xf32>
    %304 = vector.extract_strided_slice %296 {offsets = [0, 64], sizes = [8, 16], strides = [1, 1]} : vector<8x96xf32> to vector<8x16xf32>
    %cst_119 = arith.constant dense<0.000000e+00> : vector<8x8xf32>
    %305 = tpu.matmul %302, %303, %cst_119 {dimension_numbers = #tpu.dot_dimension_numbers<[1], [1], [0], [0], [0, 0, 1, 0], [], []>} : vector<8x16xf32>, vector<8x16xf32>, vector<8x8xf32> -> vector<8x8xf32>
    %306 = arith.addf %305, %299 : vector<8x8xf32>
    %cst_120 = arith.constant dense<0xFF800000> : vector<8xf32>
    %307 = vector.multi_reduction <maximumf>, %306, %cst_120 [1] : vector<8x8xf32> to vector<8xf32>
    %308 = vector.shape_cast %307 : vector<8xf32> to vector<8x1xf32>
    %309 = vector.broadcast %308 : vector<8x1xf32> to vector<8x8xf32>
    %310 = arith.subf %306, %309 : vector<8x8xf32>
    %311 = math.exp %310 : vector<8x8xf32>
    %cst_121 = arith.constant dense<0.000000e+00> : vector<8xf32>
    %312 = vector.multi_reduction <add>, %311, %cst_121 [1] : vector<8x8xf32> to vector<8xf32>
    %313 = vector.shape_cast %312 : vector<8xf32> to vector<8x1xf32>
    %314 = vector.broadcast %313 : vector<8x1xf32> to vector<8x8xf32>
    %315 = arith.divf %311, %314 : vector<8x8xf32>
    %cst_122 = arith.constant dense<0.000000e+00> : vector<8x16xf32>
    %316 = tpu.matmul %315, %304, %cst_122 {dimension_numbers = #tpu.dot_dimension_numbers<[1], [0], [0], [1], [0, 0, 1, 1], [], []>} : vector<8x8xf32>, vector<8x16xf32>, vector<8x16xf32> -> vector<8x16xf32>
    %317 = vector.extract_strided_slice %296 {offsets = [0, 16], sizes = [8, 16], strides = [1, 1]} : vector<8x96xf32> to vector<8x16xf32>
    %cst_123 = arith.constant 2.500000e-01 : f32
    %318 = vector.broadcast %cst_123 : f32 to vector<8x16xf32>
    %319 = arith.mulf %317, %318 : vector<8x16xf32>
    %320 = vector.extract_strided_slice %296 {offsets = [0, 48], sizes = [8, 16], strides = [1, 1]} : vector<8x96xf32> to vector<8x16xf32>
    %321 = vector.extract_strided_slice %296 {offsets = [0, 80], sizes = [8, 16], strides = [1, 1]} : vector<8x96xf32> to vector<8x16xf32>
    %cst_124 = arith.constant dense<0.000000e+00> : vector<8x8xf32>
    %322 = tpu.matmul %319, %320, %cst_124 {dimension_numbers = #tpu.dot_dimension_numbers<[1], [1], [0], [0], [0, 0, 1, 0], [], []>} : vector<8x16xf32>, vector<8x16xf32>, vector<8x8xf32> -> vector<8x8xf32>
    %323 = arith.addf %322, %299 : vector<8x8xf32>
    %cst_125 = arith.constant dense<0xFF800000> : vector<8xf32>
    %324 = vector.multi_reduction <maximumf>, %323, %cst_125 [1] : vector<8x8xf32> to vector<8xf32>
    %325 = vector.shape_cast %324 : vector<8xf32> to vector<8x1xf32>
    %326 = vector.broadcast %325 : vector<8x1xf32> to vector<8x8xf32>
    %327 = arith.subf %323, %326 : vector<8x8xf32>
    %328 = math.exp %327 : vector<8x8xf32>
    %cst_126 = arith.constant dense<0.000000e+00> : vector<8xf32>
    %329 = vector.multi_reduction <add>, %328, %cst_126 [1] : vector<8x8xf32> to vector<8xf32>
    %330 = vector.shape_cast %329 : vector<8xf32> to vector<8x1xf32>
    %331 = vector.broadcast %330 : vector<8x1xf32> to vector<8x8xf32>
    %332 = arith.divf %328, %331 : vector<8x8xf32>
    %cst_127 = arith.constant dense<0.000000e+00> : vector<8x16xf32>
    %333 = tpu.matmul %332, %321, %cst_127 {dimension_numbers = #tpu.dot_dimension_numbers<[1], [0], [0], [1], [0, 0, 1, 1], [], []>} : vector<8x8xf32>, vector<8x16xf32>, vector<8x16xf32> -> vector<8x16xf32>
    %334 = tpu.concatenate %316, %333 in 1 : vector<8x16xf32>, vector<8x16xf32> -> vector<8x32xf32>
    %335 = tpu.concatenate %295, %334 in 0 : vector<8x32xf32>, vector<8x32xf32> -> vector<16x32xf32>
    %c1_128 = arith.constant 1 : index
    %c0_129 = arith.constant 0 : index
    %c0_130 = arith.constant 0 : index
    %336 = vector.load %arg9[%c1_128, %c0_129, %c0_130] : memref<2x32x32xf32, #tpu.memory_space<vmem>>, vector<1x32x32xf32>
    %337 = vector.shape_cast %336 : vector<1x32x32xf32> to vector<32x32xf32>
    %cst_131 = arith.constant dense<0.000000e+00> : vector<16x32xf32>
    %338 = tpu.matmul %335, %337, %cst_131 {dimension_numbers = #tpu.dot_dimension_numbers<[1], [0], [0], [1], [0, 0, 1, 1], [], []>} : vector<16x32xf32>, vector<32x32xf32>, vector<16x32xf32> -> vector<16x32xf32>
    %c1_132 = arith.constant 1 : index
    %c0_133 = arith.constant 0 : index
    %c0_134 = arith.constant 0 : index
    %339 = vector.load %arg10[%c1_132, %c0_133, %c0_134] : memref<2x1x32xf32, #tpu.memory_space<vmem>>, vector<1x1x32xf32>
    %340 = vector.shape_cast %339 : vector<1x1x32xf32> to vector<1x32xf32>
    %341 = vector.broadcast %340 : vector<1x32xf32> to vector<16x32xf32>
    %342 = arith.addf %338, %341 : vector<16x32xf32>
    %c1_135 = arith.constant 1 : index
    %c0_136 = arith.constant 0 : index
    %c0_137 = arith.constant 0 : index
    %343 = vector.load %arg11[%c1_135, %c0_136, %c0_137] : memref<2x2x32xf32, #tpu.memory_space<vmem>>, vector<1x2x32xf32>
    %344 = vector.shape_cast %343 : vector<1x2x32xf32> to vector<2x32xf32>
    %345 = arith.addf %249, %342 : vector<16x32xf32>
    %346 = vector.extract_strided_slice %344 {offsets = [0, 0], sizes = [1, 32], strides = [1, 1]} : vector<2x32xf32> to vector<1x32xf32>
    %347 = vector.extract_strided_slice %344 {offsets = [1, 0], sizes = [1, 32], strides = [1, 1]} : vector<2x32xf32> to vector<1x32xf32>
    %cst_138 = arith.constant dense<0.000000e+00> : vector<16xf32>
    %348 = vector.multi_reduction <add>, %345, %cst_138 [1] : vector<16x32xf32> to vector<16xf32>
    %349 = vector.shape_cast %348 : vector<16xf32> to vector<16x1xf32>
    %cst_139 = arith.constant 3.200000e+01 : f32
    %350 = vector.broadcast %cst_139 : f32 to vector<16x1xf32>
    %351 = arith.divf %349, %350 : vector<16x1xf32>
    %352 = vector.broadcast %351 : vector<16x1xf32> to vector<16x32xf32>
    %353 = arith.subf %345, %352 : vector<16x32xf32>
    %354 = arith.mulf %353, %353 : vector<16x32xf32>
    %cst_140 = arith.constant dense<0.000000e+00> : vector<16xf32>
    %355 = vector.multi_reduction <add>, %354, %cst_140 [1] : vector<16x32xf32> to vector<16xf32>
    %356 = vector.shape_cast %355 : vector<16xf32> to vector<16x1xf32>
    %cst_141 = arith.constant 3.200000e+01 : f32
    %357 = vector.broadcast %cst_141 : f32 to vector<16x1xf32>
    %358 = arith.divf %356, %357 : vector<16x1xf32>
    %359 = vector.broadcast %351 : vector<16x1xf32> to vector<16x32xf32>
    %360 = arith.subf %345, %359 : vector<16x32xf32>
    %cst_142 = arith.constant 9.99999996E-13 : f32
    %361 = vector.broadcast %cst_142 : f32 to vector<16x1xf32>
    %362 = arith.addf %358, %361 : vector<16x1xf32>
    %363 = math.rsqrt %362 : vector<16x1xf32>
    %364 = vector.broadcast %363 : vector<16x1xf32> to vector<16x32xf32>
    %365 = arith.mulf %360, %364 : vector<16x32xf32>
    %366 = vector.broadcast %346 : vector<1x32xf32> to vector<16x32xf32>
    %367 = arith.mulf %365, %366 : vector<16x32xf32>
    %368 = vector.broadcast %347 : vector<1x32xf32> to vector<16x32xf32>
    %369 = arith.addf %367, %368 : vector<16x32xf32>
    %c1_143 = arith.constant 1 : index
    %c0_144 = arith.constant 0 : index
    %c0_145 = arith.constant 0 : index
    %370 = vector.load %arg12[%c1_143, %c0_144, %c0_145] : memref<2x32x64xf32, #tpu.memory_space<vmem>>, vector<1x32x64xf32>
    %371 = vector.shape_cast %370 : vector<1x32x64xf32> to vector<32x64xf32>
    %cst_146 = arith.constant dense<0.000000e+00> : vector<16x64xf32>
    %372 = tpu.matmul %369, %371, %cst_146 {dimension_numbers = #tpu.dot_dimension_numbers<[1], [0], [0], [1], [0, 0, 1, 1], [], []>} : vector<16x32xf32>, vector<32x64xf32>, vector<16x64xf32> -> vector<16x64xf32>
    %c1_147 = arith.constant 1 : index
    %c0_148 = arith.constant 0 : index
    %c0_149 = arith.constant 0 : index
    %373 = vector.load %arg13[%c1_147, %c0_148, %c0_149] : memref<2x1x64xf32, #tpu.memory_space<vmem>>, vector<1x1x64xf32>
    %374 = vector.shape_cast %373 : vector<1x1x64xf32> to vector<1x64xf32>
    %375 = vector.broadcast %374 : vector<1x64xf32> to vector<16x64xf32>
    %376 = arith.addf %372, %375 : vector<16x64xf32>
    %cst_150 = arith.constant 5.000000e-01 : f32
    %377 = vector.broadcast %cst_150 : f32 to vector<16x64xf32>
    %378 = arith.mulf %377, %376 : vector<16x64xf32>
    %cst_151 = arith.constant 0.707106769 : f32
    %379 = vector.broadcast %cst_151 : f32 to vector<16x64xf32>
    %380 = arith.mulf %376, %379 : vector<16x64xf32>
    %381 = math.absf %380 : vector<16x64xf32>
    %cst_152 = arith.constant 0.327591091 : f32
    %382 = vector.broadcast %cst_152 : f32 to vector<16x64xf32>
    %383 = arith.mulf %382, %381 : vector<16x64xf32>
    %cst_153 = arith.constant 1.000000e+00 : f32
    %384 = vector.broadcast %cst_153 : f32 to vector<16x64xf32>
    %385 = arith.addf %384, %383 : vector<16x64xf32>
    %cst_154 = arith.constant 1.000000e+00 : f32
    %386 = vector.broadcast %cst_154 : f32 to vector<16x64xf32>
    %387 = arith.divf %386, %385 : vector<16x64xf32>
    %cst_155 = arith.constant 1.06140542 : f32
    %388 = vector.broadcast %cst_155 : f32 to vector<16x64xf32>
    %389 = arith.mulf %388, %387 : vector<16x64xf32>
    %cst_156 = arith.constant -1.45315206 : f32
    %390 = vector.broadcast %cst_156 : f32 to vector<16x64xf32>
    %391 = arith.addf %389, %390 : vector<16x64xf32>
    %392 = arith.mulf %391, %387 : vector<16x64xf32>
    %cst_157 = arith.constant 1.42141378 : f32
    %393 = vector.broadcast %cst_157 : f32 to vector<16x64xf32>
    %394 = arith.addf %392, %393 : vector<16x64xf32>
    %395 = arith.mulf %394, %387 : vector<16x64xf32>
    %cst_158 = arith.constant -0.284496725 : f32
    %396 = vector.broadcast %cst_158 : f32 to vector<16x64xf32>
    %397 = arith.addf %395, %396 : vector<16x64xf32>
    %398 = arith.mulf %397, %387 : vector<16x64xf32>
    %cst_159 = arith.constant 0.254829586 : f32
    %399 = vector.broadcast %cst_159 : f32 to vector<16x64xf32>
    %400 = arith.addf %398, %399 : vector<16x64xf32>
    %401 = arith.mulf %400, %387 : vector<16x64xf32>
    %cst_160 = arith.constant 0.000000e+00 : f32
    %402 = vector.broadcast %cst_160 : f32 to vector<16x64xf32>
    %403 = arith.subf %402, %381 : vector<16x64xf32>
    %404 = arith.mulf %403, %381 : vector<16x64xf32>
    %405 = math.exp %404 : vector<16x64xf32>
    %406 = arith.mulf %401, %405 : vector<16x64xf32>
    %cst_161 = arith.constant 1.000000e+00 : f32
    %407 = vector.broadcast %cst_161 : f32 to vector<16x64xf32>
    %408 = arith.subf %407, %406 : vector<16x64xf32>
    %cst_162 = arith.constant 0.000000e+00 : f32
    %409 = vector.broadcast %cst_162 : f32 to vector<16x64xf32>
    %410 = arith.cmpf oge, %380, %409 : vector<16x64xf32>
    %cst_163 = arith.constant 0.000000e+00 : f32
    %411 = vector.broadcast %cst_163 : f32 to vector<16x64xf32>
    %412 = arith.subf %411, %408 : vector<16x64xf32>
    %413 = arith.select %410, %408, %412 : vector<16x64xi1>, vector<16x64xf32>
    %cst_164 = arith.constant 1.000000e+00 : f32
    %414 = vector.broadcast %cst_164 : f32 to vector<16x64xf32>
    %415 = arith.addf %414, %413 : vector<16x64xf32>
    %416 = arith.mulf %378, %415 : vector<16x64xf32>
    %c1_165 = arith.constant 1 : index
    %c0_166 = arith.constant 0 : index
    %c0_167 = arith.constant 0 : index
    %417 = vector.load %arg14[%c1_165, %c0_166, %c0_167] : memref<2x64x32xf32, #tpu.memory_space<vmem>>, vector<1x64x32xf32>
    %418 = vector.shape_cast %417 : vector<1x64x32xf32> to vector<64x32xf32>
    %cst_168 = arith.constant dense<0.000000e+00> : vector<16x32xf32>
    %419 = tpu.matmul %416, %418, %cst_168 {dimension_numbers = #tpu.dot_dimension_numbers<[1], [0], [0], [1], [0, 0, 1, 1], [], []>} : vector<16x64xf32>, vector<64x32xf32>, vector<16x32xf32> -> vector<16x32xf32>
    %c1_169 = arith.constant 1 : index
    %c0_170 = arith.constant 0 : index
    %c0_171 = arith.constant 0 : index
    %420 = vector.load %arg15[%c1_169, %c0_170, %c0_171] : memref<2x1x32xf32, #tpu.memory_space<vmem>>, vector<1x1x32xf32>
    %421 = vector.shape_cast %420 : vector<1x1x32xf32> to vector<1x32xf32>
    %422 = vector.broadcast %421 : vector<1x32xf32> to vector<16x32xf32>
    %423 = arith.addf %419, %422 : vector<16x32xf32>
    %c1_172 = arith.constant 1 : index
    %c0_173 = arith.constant 0 : index
    %c0_174 = arith.constant 0 : index
    %424 = vector.load %arg16[%c1_172, %c0_173, %c0_174] : memref<2x2x32xf32, #tpu.memory_space<vmem>>, vector<1x2x32xf32>
    %425 = vector.shape_cast %424 : vector<1x2x32xf32> to vector<2x32xf32>
    %426 = arith.addf %369, %423 : vector<16x32xf32>
    %427 = vector.extract_strided_slice %425 {offsets = [0, 0], sizes = [1, 32], strides = [1, 1]} : vector<2x32xf32> to vector<1x32xf32>
    %428 = vector.extract_strided_slice %425 {offsets = [1, 0], sizes = [1, 32], strides = [1, 1]} : vector<2x32xf32> to vector<1x32xf32>
    %cst_175 = arith.constant dense<0.000000e+00> : vector<16xf32>
    %429 = vector.multi_reduction <add>, %426, %cst_175 [1] : vector<16x32xf32> to vector<16xf32>
    %430 = vector.shape_cast %429 : vector<16xf32> to vector<16x1xf32>
    %cst_176 = arith.constant 3.200000e+01 : f32
    %431 = vector.broadcast %cst_176 : f32 to vector<16x1xf32>
    %432 = arith.divf %430, %431 : vector<16x1xf32>
    %433 = vector.broadcast %432 : vector<16x1xf32> to vector<16x32xf32>
    %434 = arith.subf %426, %433 : vector<16x32xf32>
    %435 = arith.mulf %434, %434 : vector<16x32xf32>
    %cst_177 = arith.constant dense<0.000000e+00> : vector<16xf32>
    %436 = vector.multi_reduction <add>, %435, %cst_177 [1] : vector<16x32xf32> to vector<16xf32>
    %437 = vector.shape_cast %436 : vector<16xf32> to vector<16x1xf32>
    %cst_178 = arith.constant 3.200000e+01 : f32
    %438 = vector.broadcast %cst_178 : f32 to vector<16x1xf32>
    %439 = arith.divf %437, %438 : vector<16x1xf32>
    %440 = vector.broadcast %432 : vector<16x1xf32> to vector<16x32xf32>
    %441 = arith.subf %426, %440 : vector<16x32xf32>
    %cst_179 = arith.constant 9.99999996E-13 : f32
    %442 = vector.broadcast %cst_179 : f32 to vector<16x1xf32>
    %443 = arith.addf %439, %442 : vector<16x1xf32>
    %444 = math.rsqrt %443 : vector<16x1xf32>
    %445 = vector.broadcast %444 : vector<16x1xf32> to vector<16x32xf32>
    %446 = arith.mulf %441, %445 : vector<16x32xf32>
    %447 = vector.broadcast %427 : vector<1x32xf32> to vector<16x32xf32>
    %448 = arith.mulf %446, %447 : vector<16x32xf32>
    %449 = vector.broadcast %428 : vector<1x32xf32> to vector<16x32xf32>
    %450 = arith.addf %448, %449 : vector<16x32xf32>
    %451 = tpu.iota {dimensions = array<i32: 1>} : vector<2x16xi32>
    %452 = tpu.iota {dimensions = array<i32: 0>} : vector<2x16xi32>
    %c8_i32 = arith.constant 8 : i32
    %453 = vector.broadcast %c8_i32 : i32 to vector<2x16xi32>
    %454 = arith.muli %452, %453 : vector<2x16xi32>
    %455 = arith.cmpi eq, %451, %454 : vector<2x16xi32>
    %456 = arith.extui %455 : vector<2x16xi1> to vector<2x16xi32>
    %457 = arith.sitofp %456 : vector<2x16xi32> to vector<2x16xf32>
    %cst_180 = arith.constant dense<0.000000e+00> : vector<2x32xf32>
    %458 = tpu.matmul %457, %450, %cst_180 {dimension_numbers = #tpu.dot_dimension_numbers<[1], [0], [0], [1], [0, 0, 1, 1], [], []>} : vector<2x16xf32>, vector<16x32xf32>, vector<2x32xf32> -> vector<2x32xf32>
    %c0_181 = arith.constant 0 : index
    %c0_182 = arith.constant 0 : index
    %459 = vector.load %arg17[%c0_181, %c0_182] : memref<2x32xf32, #tpu.memory_space<vmem>>, vector<2x32xf32>
    %460 = arith.mulf %458, %459 : vector<2x32xf32>
    %c0_183 = arith.constant 0 : index
    %c0_184 = arith.constant 0 : index
    %461 = vector.load %arg18[%c0_183, %c0_184] : memref<32x32xf32, #tpu.memory_space<vmem>>, vector<32x32xf32>
    %cst_185 = arith.constant dense<0.000000e+00> : vector<2x32xf32>
    %462 = tpu.matmul %460, %461, %cst_185 {dimension_numbers = #tpu.dot_dimension_numbers<[1], [0], [0], [1], [0, 0, 1, 1], [], []>} : vector<2x32xf32>, vector<32x32xf32>, vector<2x32xf32> -> vector<2x32xf32>
    %c0_186 = arith.constant 0 : index
    %c0_187 = arith.constant 0 : index
    %463 = vector.load %arg19[%c0_186, %c0_187] : memref<1x32xf32, #tpu.memory_space<vmem>>, vector<1x32xf32>
    %464 = vector.broadcast %463 : vector<1x32xf32> to vector<2x32xf32>
    %465 = arith.addf %462, %464 : vector<2x32xf32>
    %cst_188 = arith.constant 0.000000e+00 : f32
    %466 = vector.broadcast %cst_188 : f32 to vector<2x32xf32>
    %467 = arith.maximumf %465, %466 : vector<2x32xf32>
    %c0_189 = arith.constant 0 : index
    %c0_190 = arith.constant 0 : index
    %468 = vector.load %arg20[%c0_189, %c0_190] : memref<32x6xf32, #tpu.memory_space<vmem>>, vector<32x6xf32>
    %cst_191 = arith.constant dense<0.000000e+00> : vector<2x6xf32>
    %469 = tpu.matmul %467, %468, %cst_191 {dimension_numbers = #tpu.dot_dimension_numbers<[1], [0], [0], [1], [0, 0, 1, 1], [], []>} : vector<2x32xf32>, vector<32x6xf32>, vector<2x6xf32> -> vector<2x6xf32>
    %c0_192 = arith.constant 0 : index
    %c0_193 = arith.constant 0 : index
    %470 = vector.load %arg21[%c0_192, %c0_193] : memref<1x6xf32, #tpu.memory_space<vmem>>, vector<1x6xf32>
    %471 = vector.broadcast %470 : vector<1x6xf32> to vector<2x6xf32>
    %472 = arith.addf %469, %471 : vector<2x6xf32>
    %c0_194 = arith.constant 0 : index
    %c0_195 = arith.constant 0 : index
    %473 = vector.load %arg22[%c0_194, %c0_195] : memref<2x6xf32, #tpu.memory_space<vmem>>, vector<2x6xf32>
    tpu.vector_store %arg22[%c0_194, %c0_195], %472 {strides = array<i32>} : memref<2x6xf32, #tpu.memory_space<vmem>>, vector<2x6xf32>,
    return
  }
}

</mosaic_0001>

<bundles_post_ra>
// kernel: scenario_model_forward.1
= control target key start
LH: loop header
LB: loop body
LE: loop exit
PB: predicated region body
PF: predicated region fallthrough
CT: control target
= control target key end

     0   :  { %s4282_s0 = inlined_call_operand.vmem [shape: s32[16,1], index: 0, kind: input, shape index: {}]   ;;  %s4283_s1 = inlined_call_operand.vmem [shape: s32[16,1], index: 1, kind: input, shape index: {}]   ;;  %s4284_s2 = inlined_call_operand.vmem [shape: f32[2,8], index: 2, kind: input, shape index: {}]   ;;  %s4285_s3 = inlined_call_operand.vmem [shape: f32[64,32], index: 3, kind: input, shape index: {}]   ;;  %s4286_s4 = inlined_call_operand.vmem [shape: f32[16,32], index: 4, kind: input, shape index: {}]   ;;  %s4287_s5 = inlined_call_operand.vmem [shape: f32[2,32], index: 5, kind: input, shape index: {}]   ;;  %s4288_s6 = inlined_call_operand.vmem [shape: f32[2,32], index: 6, kind: input, shape index: {}]   ;;  %s4289_s7 = inlined_call_operand.vmem [shape: f32[2,32,96], index: 7, kind: input, shape index: {}]   ;;  %s4290_s8 = inlined_call_operand.vmem [shape: f32[2,1,96], index: 8, kind: input, shape index: {}]   ;;  %s4291_s9 = inlined_call_operand.vmem [shape: f32[2,32,32], index: 9, kind: input, shape index: {}]   ;;  %s4292_s10 = inlined_call_operand.vmem [shape: f32[2,1,32], index: 10, kind: input, shape index: {}]   ;;  %s4293_s11 = inlined_call_operand.vmem [shape: f32[2,2,32], index: 11, kind: input, shape index: {}]   ;;  %s4294_s12 = inlined_call_operand.vmem [shape: f32[2,32,64], index: 12, kind: input, shape index: {}]   ;;  %s4295_s13 = inlined_call_operand.vmem [shape: f32[2,1,64], index: 13, kind: input, shape index: {}]   ;;  %s4296_s14 = inlined_call_operand.vmem [shape: f32[2,64,32], index: 14, kind: input, shape index: {}]   ;;  %s4297_s15 = inlined_call_operand.vmem [shape: f32[2,1,32], index: 15, kind: input, shape index: {}]   ;;  %s4298_s16 = inlined_call_operand.vmem [shape: f32[2,2,32], index: 16, kind: input, shape index: {}]   ;;  %s4299_s17 = inlined_call_operand.vmem [shape: f32[2,32], index: 17, kind: input, shape index: {}]   ;;  %s4300_s18 = inlined_call_operand.vmem [shape: f32[32,32], index: 18, kind: input, shape index: {}]   ;;  %s4301_s19 = inlined_call_operand.vmem [shape: f32[1,32], index: 19, kind: input, shape index: {}]   ;;  %s4302_s20 = inlined_call_operand.vmem [shape: f32[32,6], index: 20, kind: input, shape index: {}]   ;;  %s4303_s21 = inlined_call_operand.vmem [shape: f32[1,6], index: 21, kind: input, shape index: {}]   ;;  %s4304_s22 = inlined_call_operand.hbm [shape: f32[2,6], index: 22, kind: output, shape index: {}]  }
   0x1   :  { %4309 = sst [smem:[#allocation5_spill]] %s4282_s0 }
   0x2   :  { %4310 = sst [smem:[#allocation6_spill]] %s4283_s1 }
   0x3   :  { %4311 = sst [smem:[#allocation7_spill]] %s4284_s2 }
   0x4   :  { %4312 = sst [smem:[#allocation8_spill]] %s4285_s3 }
   0x5   :  { %4313 = sst [smem:[#allocation9_spill]] %s4286_s4 }
   0x6   :  { %4314 = sst [smem:[#allocation10_spill]] %s4287_s5 }
   0x7   :  { %4315 = sst [smem:[#allocation11_spill]] %s4288_s6 }
   0x8   :  { %s4316_s29 = sld [smem:[#allocation5_spill]]  ;;  %v3633_v2 = vmov 0   ;;  %s4317_s1 = sld [smem:[#allocation8_spill]] }
   0x9   :  { %3540 = vset.pattern.permute.xlu1 %v3633_v2  ;;  %3539 = vset.pattern.permute.xlu0 %v3633_v2  ;;  %s4318_s26 = sld [smem:[#allocation6_spill]] }
   0xe   :  { %v73_v0 = vld [vmem:[%s4316_s29 + $0x8] sm:$0xff]  ;;  %v72_v1 = vld [vmem:[%s4316_s29] sm:$0xff]  ;;  %v105_v7 = vld [vmem:[%s4317_s1 + $0x10] sm:$0xff] }
   0xf   :  { %v103_v3 = vld [vmem:[%s4317_s1] sm:$0xff]  ;;  %v104_v4 = vld [vmem:[%s4317_s1 + $0x8] sm:$0xff]  ;;  %80 = vperm.xlu1 %3540, %v73_v0   ;;  %77 = vperm.xlu0 %3539, %v72_v1   ;;  %v106_v8 = vld [vmem:[%s4317_s1 + $0x18] sm:$0xff] }
  0x10   :  { %v89_v5 = vld [vmem:[%s4318_s26 + $0x8] sm:$0xff]  ;;  %v3415_v6 = vpack.c.bf16 %v104_v4, %v103_v3  ;;  %v88_v9 = vld [vmem:[%s4318_s26] sm:$0xff]  ;;  %v3419_v10 = vpack.c.bf16 %v106_v8, %v105_v7 }
  0x11   :  { %v107_v11 = vld [vmem:[%s4317_s1 + $0x20] sm:$0xff]  ;;  %v108_v12 = vld [vmem:[%s4317_s1 + $0x28] sm:$0xff] }
  0x12   :  { %3416 = vmatprep.subr.bf16.mxu0 %v3415_v6 }
  0x13   :  { %27 = vsyncpa [#allocation3], 0  ;;  %3418 = vmatpush3.bf16.msra.mxu0 %v3415_v6  ;;  %94 = vperm.xlu1 %3540, %v89_v5   ;;  %v3423_v13 = vpack.c.bf16 %v108_v12, %v107_v11  ;;  %s4319_s25 = sld [smem:[#allocation10_spill]]  ;;  %vm119_vm0 = vcmask 1041408   ;;  %v109_v15 = vld [vmem:[%s4317_s1 + $0x30] sm:$0xff]  ;;  %v110_v16 = vld [vmem:[%s4317_s1 + $0x38] sm:$0xff]  ;;  %v74_v19 = vlaneseq }
  0x14   :  { %91 = vperm.xlu0 %3539, %v88_v9   ;;  %3420 = vmatprep.subr.bf16.mxu0 %v3419_v10  ;;  %v3427_v17 = vpack.c.bf16 %v110_v16, %v109_v15  ;;  %v3634_v18 = vmov 0.0   ;;  %vm198_vm1 = vcmask 523264   ;;  %vm112_vm4 = vcmask 15360   ;;  %s4320_s29 = sld [smem:[#allocation9_spill]]  ;;  %v327_v50 = vld [vmem:[%s4289_s7] sm:$0xff]  ;;  %v328_v51 = vld [vmem:[%s4289_s7 + $0x8] sm:$0xff] }
  0x15   :  { %v3800_v20 = vand.u32 127, %v74_v19  ;;  %vm284_vm7 = vcmask 261120   ;;  %v3431_v52 = vpack.c.bf16 %v328_v51, %v327_v50  ;;  %v329_v53 = vld [vmem:[%s4289_s7 + $0x10] sm:$0xff]  ;;  %v330_v54 = vld [vmem:[%s4289_s7 + $0x18] sm:$0xff]  ;;  %s4321_s27 = sld [smem:[#allocation11_spill]]  ;;  %vm3635_vm8 = vmmov 0  }
  0x16   :  { %v3435_v55 = vpack.c.bf16 %v330_v54, %v329_v53  ;;  %v2984_v8 = vld [vmem:[%s4290_s8] ss:$0 sm:$0xff]  ;;  %s3636_s30 = smov 96   ;;  %s3637_s4 = smov 80   ;;  %vm427_vm9 = vcmask 130048   ;;  %v3876_v16 = vshrl.u32 %v74_v19, 7 }
  0x17   :  { %3422 = vmatpush3.bf16.msra.mxu0 %v3419_v10  ;;  %s3638_s0 = smov 112   ;;  %s4322_s24 = sld [smem:[#allocation7_spill]]  ;;  %vm503_vm10 = vcmask 64512  }
  0x18   :  { %3424 = vmatprep.subr.bf16.mxu0 %v3423_v13  ;;  %s3639_s6 = smov 64   ;;  %s3641_s5 = smov 16  }
  0x19   :  { %v111_v14 = vld [vmem:[%s4319_s25] sm:$0x3]  ;;  %s3640_s25 = smov 48   ;;  %s3643_s1 = smov [#allocation2]  }
  0x1a   :  { %3178 = vmatprep.subr.msk.mxu1 %vm119_vm0, %v111_v14  ;;  %v102_v32 = vld [vmem:[%s4320_s29] sm:$0xff] }
  0x1b   :  { %3179 = vmatpush3.msk.msra.mxu1 %vm119_vm0, %v111_v14  ;;  %3426 = vmatpush3.bf16.msra.mxu0 %v3423_v13  ;;  %v2982_v63 = vld [vmem:[%s4321_s27] ss:$0 sm:$0xff]  ;;  %v2983_v1 = vld [vmem:[%s4321_s27 + $0x1] ss:$0 sm:$0xff]  ;;  %vm2957_vm0 = vcmask 41984  }
  0x1c   :  { %3428 = vmatprep.subr.bf16.mxu0 %v3427_v17  ;;  %3432 = vmatprep.subr.bf16.mxu1 %v3431_v52 }
  0x1d   :  { %v324_v15 = vld [vmem:[%s4322_s24] sm:$0x3] }
  0x1f   :  { %3430 = vmatpush3.bf16.msra.mxu0 %v3427_v17  ;;  %v325_v17 = vsub.f32 1.0, %v324_v15 }
  0x20   :  { %3228 = vmatprep.subr.mxu0 %v3634_v18 }
  0x8e   :  { %v81_v21 = vpop.permute.xlu1 %80  ;;  %v78_v22 = vpop.permute.xlu0 %77 }
  0x8f   :  { %vm83_vm2 = vcmp.eq.s32.totalorder %v3800_v20, %v81_v21  ;;  %vm82_vm3 = vcmp.eq.s32.totalorder %v3800_v20, %v78_v22  ;;  %v326_v21 = vmul.f32 -1e+09, %v325_v17  ;;  %v3879_v22 = vsub.s32 0, %v3876_v16 }
  0x90   :  { %v2974_v23 = vsel %vm83_vm2, 1.0, %v3634_v18  ;;  %v2973_v24 = vsel %vm82_vm3, 1.0, %v3634_v18 }
  0x91   :  { %3199 = vmatprep.mubr.msk.f32.mxu0 %vm198_vm1, %v2973_v24 }
  0x92   :  { %v95_v25 = vpop.permute.xlu1 %94  ;;  %3200 = vmatmul.mubr.msk.f32.vlgmr.msra.gmra.mrb[0].mxu0 %vm198_vm1, %v2974_v23  ;;  %v3882_v23 = vrot.slane %v326_v21, %v3879_v22 }
  0x93   :  { %v92_v26 = vpop.permute.xlu0 %91  ;;  %vm97_vm5 = vcmp.eq.s32.totalorder %v3800_v20, %v95_v25  ;;  %3230 = vmatprep.mubr.msk.f32.mxu0 %vm3635_vm8, %v3634_v18 }
  0x94   :  { %vm96_vm6 = vcmp.eq.s32.totalorder %v3800_v20, %v92_v26  ;;  %v2976_v27 = vsel %vm97_vm5, 1.0, %v3634_v18 }
  0x95   :  { %v2975_v28 = vsel %vm96_vm6, 1.0, %v3634_v18 }
  0x96   :  { %3180 = vmatprep.mubr.msk.f32.mxu1 %vm112_vm4, %v2975_v28 }
  0x97   :  { %3181 = vmatmul.mubr.msk.f32.vlgmr.msra.gmra.mrb[0].mxu1 %vm112_vm4, %v2976_v27 }
  0x98   :  { %3434 = vmatpush3.bf16.msra.mxu1 %v3431_v52 }
  0x99   :  { %3436 = vmatprep.subr.bf16.mxu1 %v3435_v55 }
  0x9c   :  { %3438 = vmatpush3.bf16.msra.mxu1 %v3435_v55 }
  0x9d   :  { %3213 = vmatprep.subr.mxu1 %v3634_v18 }
 0x165   :  { %v3201_v29 = vpop.f32.mrb[0].mxu0 }
 0x166   :  { %v271_v30 = vpop.f32.mrb[1].mxu0 }
 0x16a   :  { %v3182_v31 = vpop.f32.mrb[0].mxu1 }
 0x16b   :  { %v277_v33 = vadd.f32 %v3201_v29, %v3182_v31  ;;  %v189_v34 = vpop.f32.mrb[1].mxu1 }
 0x16c   :  { %v272_v35 = vadd.f32 %v271_v30, %v189_v34 }
 0x16d   :  { %v281_v36 = vadd.f32 %v277_v33, %v102_v32 }
 0x16e   :  { %v280_v37 = vadd.f32 %v272_v35, %v102_v32 }
 0x16f   :  { %v288_v38 = vsel %vm284_vm7, %v281_v36, 0.0 }
 0x170   :  { %289 = vadd.xlane.f32.xlu1 %v288_v38  ;;  %v285_v39 = vsel %vm284_vm7, %v280_v37, 0.0 }
 0x171   :  { %286 = vadd.xlane.f32.xlu0 %v285_v39 }
 0x1fd   :  { %v290_v40 = vpop.xlane.xlu1 %289 }
 0x1fe   :  { %v293_v41 = vmul.f32 0.03125, %v290_v40  ;;  %v287_v42 = vpop.xlane.xlu0 %286 }
 0x1ff   :  { %v292_v43 = vmul.f32 0.03125, %v287_v42 }
 0x200   :  { %v295_v44 = vsub.f32 %v281_v36, %v293_v41 }
 0x201   :  { %v294_v45 = vsub.f32 %v280_v37, %v292_v43 }
 0x202   :  { %v297_v48 = vmul.f32 %v295_v44, %v295_v44 }
 0x203   :  { %v296_v46 = vmul.f32 %v294_v45, %v294_v45 }
 0x204   :  { %v301_v49 = vsel %vm284_vm7, %v297_v48, 0.0 }
 0x205   :  { %v298_v47 = vsel %vm284_vm7, %v296_v46, 0.0 }
 0x206   :  { %299 = vadd.xlane.f32.xlu0 %v298_v47 }
 0x20a   :  { %302 = vadd.xlane.f32.xlu0 %v301_v49 }
 0x293   :  { %v300_v56 = vpop.xlane.xlu0 %299 }
 0x294   :  { %v304_v57 = vmul.f32 0.03125, %v300_v56 }
 0x296   :  { %v306_v58 = vadd.f32 1e-12, %v304_v57 }
 0x297   :  { %v303_v59 = vpop.xlane.xlu0 %302 }
 0x298   :  { %3541 = vrsqrt.f32 %v306_v58  ;;  %v305_v60 = vmul.f32 0.03125, %v303_v59 }
 0x29a   :  { %v307_v61 = vadd.f32 1e-12, %v305_v60 }
 0x29c   :  { %3543 = vrsqrt.f32 %v307_v61 }
 0x2a2   :  { %v3542_v62 = vpop.eup %3541 }
 0x2a3   :  { %v310_v0 = vmul.f32 %v3542_v62, %v294_v45 }
 0x2a5   :  { %v316_v2 = vmul.f32 %v2982_v63, %v310_v0 }
 0x2a6   :  { %v3544_v3 = vpop.eup %3543 }
 0x2a7   :  { %v311_v4 = vmul.f32 %v3544_v3, %v295_v44  ;;  %v3838_v5 = vadd.f32 %v2983_v1, %v316_v2  ;;  %v3910_v44 = vsub.s32 1, %v3876_v16 }
 0x2a9   :  { %v317_v6 = vmul.f32 %v2982_v63, %v311_v4  ;;  %3210 = vmatprep.mubr.msk.f32.mxu1 %vm284_vm7, %v3838_v5  ;;  %v3914_v48 = vrot.slane %v326_v21, %v3910_v44 }
 0x2ab   :  { %v3842_v7 = vadd.f32 %v2983_v1, %v317_v6 }
 0x2ad   :  { %3211 = vmatmul.mubr.msk.f32.vlgmr.msra.gmra.mrb[2].mxu1 %vm284_vm7, %v3842_v7 }
 0x2ae   :  { %3215 = vmatprep.mubr.msk.f32.mxu1 %vm3635_vm8, %v3634_v18 }
 0x380   :  { %v3212_v9 = vpop.f32.mrb[2].mxu1 }
 0x381   :  { %v410_v10 = vpop.f32.mrb[3].mxu1  ;;  %v3861_v13 = vadd.f32 %v3212_v9, %v2984_v8 }
 0x382   :  { %v3853_v11 = vadd.f32 %v2984_v8, %v410_v10 }
 0x383   :  { %v765_v32 = vmul.f32 0.25, %v3861_v13 }
 0x384   :  { %425 = vrot.lane.b32.xlu1 %v3853_v11, %s3636_s30  ;;  %v423_v12 = vmul.f32 0.25, %v3853_v11 }
 0x388   :  { %593 = vrot.lane.b32.xlu1 %v3853_v11, %s3637_s4 }
 0x38c   :  { %591 = vrot.lane.b32.xlu1 %v423_v12, %s3638_s0 }
 0x390   :  { %767 = vrot.lane.b32.xlu1 %v3861_v13, %s3636_s30 }
 0x394   :  { %933 = vrot.lane.b32.xlu1 %v3861_v13, %s3637_s4 }
 0x3f6   :  { %v426_v14 = vpop.permute.xlu1 %425 }
 0x3f7   :  { %3214 = vmatpush3.xpose.msk.msra.mxu1 %vm427_vm9, %v426_v14 }
 0x3f8   :  { %3218 = vmatprep.subr.mxu1 %v3634_v18 }
 0x3fa   :  { %3216 = vmatmul.mubr.msk.f32.vlgmr.msra.gmra.mrb[4].mxu1 %vm427_vm9, %v423_v12  ;;  %v594_v34 = vpop.permute.xlu1 %593 }
 0x3fb   :  { %3220 = vmatprep.mubr.msk.f32.mxu1 %vm3635_vm8, %v3634_v18 }
 0x3fe   :  { %v592_v36 = vpop.permute.xlu1 %591 }
 0x402   :  { %v768_v39 = vpop.permute.xlu1 %767 }
 0x406   :  { %v934_v40 = vpop.permute.xlu1 %933 }
 0x4cd   :  { %v499_v24 = vpop.f32.mrb[4].mxu1 }
 0x4ce   :  { %v500_v25 = vadd.f32 %v499_v24, %v3882_v23  ;;  %v3217_v26 = vpop.f32.mrb[5].mxu1 }
 0x4d0   :  { %v504_v27 = vsel %vm503_vm10, %v500_v25, -inf }
 0x4d1   :  { %505 = vmax.xlane.f32.xlu0 %v504_v27 }
 0x55e   :  { %v506_v28 = vpop.xlane.xlu0 %505 }
 0x55f   :  { %v507_v29 = vsub.f32 %v500_v25, %v506_v28 }
 0x561   :  { %v508_v19 = vmul.f32 1.442695, %v507_v29  ;;  %v1101_v29 = vld [vmem:[%s4291_s9] sm:$0xff] }
 0x563   :  { %3545 = vpow2.f32 %v508_v19  ;;  %v1102_v19 = vld [vmem:[%s4291_s9 + $0x8] sm:$0xff] }
 0x56d   :  { %v3546_v30 = vpop.eup %3545 }
 0x56e   :  { %v510_v31 = vsel %vm503_vm10, %v3546_v30, 0.0 }
 0x56f   :  { %511 = vadd.xlane.f32.xlu0 %v510_v31  ;;  %v3439_v31 = vpack.c.bf16 %v1102_v19, %v1101_v29  ;;  %v1380_v19 = vld [vmem:[%s4296_s14] sm:$0xff] }
 0x585   :  { %515 = vrot.lane.b32.xlu0 %v3853_v11, %s3639_s6 }
 0x589   :  { %931 = vrot.lane.b32.xlu0 %v765_v32, %s3638_s0 }
 0x5fc   :  { %v512_v33 = vpop.xlane.xlu0 %511 }
 0x5fd   :  { %3547 = vrcp.f32 %v512_v33 }
 0x600   :  { %v516_v35 = vpop.permute.xlu0 %515 }
 0x601   :  { %3219 = vmatpush3.msra.mxu1 %v516_v35 }
 0x602   :  { %3223 = vmatprep.subr.mxu1 %v3634_v18 }
 0x604   :  { %v932_v41 = vpop.permute.xlu0 %931 }
 0x607   :  { %v3548_v37 = vpop.eup %3547 }
 0x608   :  { %v514_v38 = vmul.f32 %v3548_v37, %v3546_v30  ;;  %v1103_v30 = vld [vmem:[%s4291_s9 + $0x10] sm:$0xff] }
 0x60a   :  { %3221 = vmatmul.mubr.msk.f32.vlgmr.msra.gmra.mrb[6].mxu1 %vm503_vm10, %v514_v38 }
 0x60b   :  { %3224 = vmatpush3.xpose.msk.msra.mxu1 %vm427_vm9, %v594_v34  ;;  %3225 = vmatprep.mubr.msk.f32.mxu1 %vm3635_vm8, %v3634_v18 }
 0x60c   :  { %3233 = vmatprep.subr.mxu1 %v3634_v18 }
 0x60e   :  { %3226 = vmatmul.mubr.msk.f32.vlgmr.msra.gmra.mrb[8].mxu1 %vm427_vm9, %v592_v36 }
 0x60f   :  { %3234 = vmatpush3.xpose.msk.msra.mxu1 %vm427_vm9, %v768_v39  ;;  %3235 = vmatprep.mubr.msk.f32.mxu1 %vm3635_vm8, %v3634_v18 }
 0x610   :  { %3243 = vmatprep.subr.mxu1 %v3634_v18 }
 0x612   :  { %3236 = vmatmul.mubr.msk.f32.vlgmr.msra.gmra.mrb[10].mxu1 %vm427_vm9, %v765_v32  ;;  %v1104_v32 = vld [vmem:[%s4291_s9 + $0x18] sm:$0xff] }
 0x613   :  { %3244 = vmatpush3.xpose.msk.msra.mxu1 %vm427_vm9, %v934_v40  ;;  %3245 = vmatprep.mubr.msk.f32.mxu1 %vm3635_vm8, %v3634_v18  ;;  %v3443_v33 = vpack.c.bf16 %v1104_v32, %v1103_v30  ;;  %v1381_v30 = vld [vmem:[%s4296_s14 + $0x8] sm:$0xff]  ;;  %v1382_v32 = vld [vmem:[%s4296_s14 + $0x10] sm:$0xff] }
 0x614   :  { %3440 = vmatprep.subr.bf16.mxu1 %v3439_v31 }
 0x616   :  { %3246 = vmatmul.mubr.msk.f32.vlgmr.msra.gmra.mrb[12].mxu1 %vm427_vm9, %v932_v41 }
 0x617   :  { %3442 = vmatpush3.bf16.msra.mxu1 %v3439_v31  ;;  %v3455_v31 = vpack.c.bf16 %v1381_v30, %v1380_v19 }
 0x618   :  { %3444 = vmatprep.subr.bf16.mxu1 %v3443_v33 }
 0x61b   :  { %3446 = vmatpush3.bf16.msra.mxu1 %v3443_v33  ;;  %v1383_v33 = vld [vmem:[%s4296_s14 + $0x18] sm:$0xff] }
 0x61c   :  { %3456 = vmatprep.subr.bf16.mxu1 %v3455_v31 }
 0x6dd   :  { %v3907_v42 = vpop.f32.mrb[6].mxu1 }
 0x6de   :  { %v3222_v43 = vpop.f32.mrb[7].mxu1 }
 0x6e1   :  { %v665_v45 = vpop.f32.mrb[8].mxu1 }
 0x6e2   :  { %v666_v46 = vadd.f32 %v665_v45, %v3882_v23  ;;  %v3227_v47 = vpop.f32.mrb[9].mxu1 }
 0x6e4   :  { %v669_v49 = vsel %vm503_vm10, %v666_v46, -inf }
 0x6e5   :  { %670 = vmax.xlane.f32.xlu1 %v669_v49  ;;  %v840_v50 = vpop.f32.mrb[10].mxu1 }
 0x6e6   :  { %v841_v51 = vadd.f32 %v840_v50, %v3914_v48  ;;  %v3237_v52 = vpop.f32.mrb[11].mxu1 }
 0x6e8   :  { %v844_v53 = vsel %vm503_vm10, %v841_v51, -inf }
 0x6e9   :  { %845 = vmax.xlane.f32.xlu0 %v844_v53  ;;  %v1005_v54 = vpop.f32.mrb[12].mxu1 }
 0x6ea   :  { %v1006_v55 = vadd.f32 %v1005_v54, %v3914_v48  ;;  %v3247_v56 = vpop.f32.mrb[13].mxu1 }
 0x6ec   :  { %v1009_v57 = vsel %vm503_vm10, %v1006_v55, -inf }
 0x6ed   :  { %1010 = vmax.xlane.f32.xlu0 %v1009_v57 }
 0x772   :  { %v671_v58 = vpop.xlane.xlu1 %670 }
 0x773   :  { %v672_v59 = vsub.f32 %v666_v46, %v671_v58  ;;  %v2999_v46 = vld [vmem:[%s4292_s10] ss:$0 sm:$0xff] }
 0x775   :  { %v673_v60 = vmul.f32 1.442695, %v672_v59 }
 0x776   :  { %v846_v61 = vpop.xlane.xlu0 %845 }
 0x777   :  { %3549 = vpow2.f32 %v673_v60  ;;  %v847_v62 = vsub.f32 %v841_v51, %v846_v61 }
 0x779   :  { %v848_v63 = vmul.f32 1.442695, %v847_v62 }
 0x77a   :  { %v1011_v4 = vpop.xlane.xlu0 %1010 }
 0x77b   :  { %3551 = vpow2.f32 %v848_v63  ;;  %v1012_v6 = vsub.f32 %v1006_v55, %v1011_v4 }
 0x77d   :  { %v1013_v8 = vmul.f32 1.442695, %v1012_v6 }
 0x77f   :  { %3553 = vpow2.f32 %v1013_v8 }
 0x781   :  { %v3550_v0 = vpop.eup %3549 }
 0x782   :  { %v675_v1 = vsel %vm503_vm10, %v3550_v0, 0.0 }
 0x783   :  { %676 = vadd.xlane.f32.xlu1 %v675_v1 }
 0x785   :  { %v3552_v2 = vpop.eup %3551 }
 0x786   :  { %v850_v3 = vsel %vm503_vm10, %v3552_v2, 0.0 }
 0x787   :  { %851 = vadd.xlane.f32.xlu0 %v850_v3  ;;  %v1237_v3 = vld [vmem:[%s4294_s12 + $0x18] sm:$0xff] }
 0x789   :  { %v3554_v9 = vpop.eup %3553 }
 0x78a   :  { %v1015_v10 = vsel %vm503_vm10, %v3554_v9, 0.0 }
 0x794   :  { %855 = vrot.lane.b32.xlu1 %v3861_v13, %s3639_s6 }
 0x79d   :  { %680 = vrot.lane.b32.xlu0 %v3853_v11, %s3640_s25 }
 0x7b8   :  { %1016 = vadd.xlane.f32.xlu1 %v1015_v10 }
 0x7c9   :  { %1020 = vrot.lane.b32.xlu1 %v3861_v13, %s3640_s25 }
 0x810   :  { %v677_v12 = vpop.xlane.xlu1 %676 }
 0x811   :  { %3555 = vrcp.f32 %v677_v12 }
 0x814   :  { %v852_v14 = vpop.xlane.xlu0 %851  ;;  %v856_v21 = vpop.permute.xlu1 %855 }
 0x815   :  { %3557 = vrcp.f32 %v852_v14 }
 0x818   :  { %v681_v15 = vpop.permute.xlu0 %680 }
 0x819   :  { %3229 = vmatpush3.msra.mxu0 %v681_v15  ;;  %v1193_v15 = vld [vmem:[%s4293_s11] sm:$0x3] }
 0x81a   :  { %3238 = vmatprep.subr.mxu0 %v3634_v18 }
 0x81b   :  { %v3556_v11 = vpop.eup %3555 }
 0x81c   :  { %v679_v17 = vmul.f32 %v3556_v11, %v3550_v0  ;;  %v1235_v0 = vld [vmem:[%s4294_s12 + $0x8] sm:$0xff]  ;;  %v1225_v11 = vrot.slane %v1193_v15, %v3879_v22 }
 0x81e   :  { %3231 = vmatmul.mubr.msk.f32.vlgmr.msra.gmra.mrb[2].mxu0 %vm503_vm10, %v679_v17 }
 0x81f   :  { %v3558_v24 = vpop.eup %3557  ;;  %3239 = vmatpush3.msra.mxu0 %v856_v21  ;;  %3240 = vmatprep.mubr.msk.f32.mxu0 %vm3635_vm8, %v3634_v18 }
 0x820   :  { %v854_v25 = vmul.f32 %v3558_v24, %v3552_v2  ;;  %3248 = vmatprep.subr.mxu0 %v3634_v18  ;;  %v1236_v2 = vld [vmem:[%s4294_s12 + $0x10] sm:$0xff]  ;;  %v1231_v24 = vrot.slane %v1193_v15, %v3910_v44 }
 0x821   :  { %v3451_v4 = vpack.c.bf16 %v1237_v3, %v1236_v2 }
 0x822   :  { %3241 = vmatmul.mubr.msk.f32.vlgmr.msra.gmra.mrb[4].mxu0 %vm503_vm10, %v854_v25 }
 0x823   :  { %3250 = vmatprep.mubr.msk.f32.mxu0 %vm3635_vm8, %v3634_v18 }
 0x845   :  { %v1017_v13 = vpop.xlane.xlu1 %1016 }
 0x846   :  { %3559 = vrcp.f32 %v1017_v13 }
 0x849   :  { %v1021_v26 = vpop.permute.xlu1 %1020 }
 0x84a   :  { %3249 = vmatpush3.msra.mxu0 %v1021_v26 }
 0x850   :  { %v3560_v27 = vpop.eup %3559 }
 0x851   :  { %v1019_v28 = vmul.f32 %v3560_v27, %v3554_v9 }
 0x853   :  { %3251 = vmatmul.mubr.msk.f32.vlgmr.msra.gmra.mrb[6].mxu0 %vm503_vm10, %v1019_v28 }
 0x8f1   :  { %v752_v34 = vpop.f32.mrb[2].mxu0 }
 0x8f2   :  { %757 = vrot.lane.b32.xlu0 %v752_v34, %s3641_s5  ;;  %v3232_v35 = vpop.f32.mrb[3].mxu0  ;;  %v3459_v34 = vpack.c.bf16 %v1383_v33, %v1382_v32 }
 0x8f3   :  { %v1384_v35 = vld [vmem:[%s4296_s14 + $0x20] sm:$0xff] }
 0x8f5   :  { %v927_v36 = vpop.f32.mrb[4].mxu0 }
 0x8f6   :  { %v3242_v37 = vpop.f32.mrb[5].mxu0 }
 0x926   :  { %v1092_v38 = vpop.f32.mrb[6].mxu0 }
 0x927   :  { %1097 = vrot.lane.b32.xlu1 %v1092_v38, %s3641_s5  ;;  %v3252_v39 = vpop.f32.mrb[7].mxu0  ;;  %v1386_v38 = vld [vmem:[%s4296_s14 + $0x30] sm:$0xff] }
 0x928   :  { %v1387_v39 = vld [vmem:[%s4296_s14 + $0x38] sm:$0xff] }
 0x964   :  { %v758_v40 = vpop.permute.xlu0 %757 }
 0x965   :  { %v760_v41 = vsel %vm427_vm9, %v3907_v42, %v758_v40  ;;  %v3467_v40 = vpack.c.bf16 %v1387_v39, %v1386_v38 }
 0x966   :  { %3261 = vmatprep.mubr.msk.f32.mxu1 %vm284_vm7, %v760_v41  ;;  %v3002_v41 = vld [vmem:[%s4295_s13] ss:$0 sm:$0xff] }
 0x999   :  { %v1098_v43 = vpop.permute.xlu1 %1097 }
 0x99a   :  { %v1100_v45 = vsel %vm427_vm9, %v927_v36, %v1098_v43  ;;  %v1385_v36 = vld [vmem:[%s4296_s14 + $0x28] sm:$0xff] }
 0x99b   :  { %3262 = vmatmul.mubr.msk.f32.vlgmr.msra.gmra.mrb[14].mxu1 %vm284_vm7, %v1100_v45  ;;  %v3463_v37 = vpack.c.bf16 %v1385_v36, %v1384_v35 }
 0x99c   :  { %3458 = vmatpush3.bf16.msra.mxu1 %v3455_v31 }
 0x99d   :  { %3460 = vmatprep.subr.bf16.mxu1 %v3459_v34 }
 0x9a0   :  { %3462 = vmatpush3.bf16.msra.mxu1 %v3459_v34 }
 0x9a1   :  { %3464 = vmatprep.subr.bf16.mxu1 %v3463_v37 }
 0x9a4   :  { %3466 = vmatpush3.bf16.msra.mxu1 %v3463_v37 }
 0x9a5   :  { %3468 = vmatprep.subr.bf16.mxu1 %v3467_v40 }
 0x9a8   :  { %3470 = vmatpush3.bf16.msra.mxu1 %v3467_v40 }
 0x9a9   :  { %3315 = vmatprep.subr.mxu1 %v3634_v18 }
 0xa6e   :  { %v3263_v47 = vpop.f32.mrb[14].mxu1 }
 0xa6f   :  { %v1190_v49 = vadd.f32 %v3263_v47, %v2999_v46  ;;  %v1184_v50 = vpop.f32.mrb[15].mxu1 }
 0xa70   :  { %v1185_v51 = vadd.f32 %v2999_v46, %v1184_v50 }
 0xa71   :  { %v1195_v52 = vadd.f32 %v1190_v49, %v3842_v7 }
 0xa72   :  { %v1194_v53 = vadd.f32 %v1185_v51, %v3838_v5  ;;  %v1234_v5 = vld [vmem:[%s4294_s12] sm:$0xff] }
 0xa73   :  { %v1199_v42 = vsel %vm284_vm7, %v1195_v52, 0.0  ;;  %v3447_v1 = vpack.c.bf16 %v1235_v0, %v1234_v5 }
 0xa74   :  { %1200 = vadd.xlane.f32.xlu1 %v1199_v42  ;;  %v1196_v54 = vsel %vm284_vm7, %v1194_v53, 0.0 }
 0xa75   :  { %1197 = vadd.xlane.f32.xlu0 %v1196_v54  ;;  %3448 = vmatprep.subr.bf16.mxu0 %v3447_v1 }
 0xa76   :  { %3450 = vmatpush3.bf16.msra.mxu0 %v3447_v1 }
 0xa77   :  { %3452 = vmatprep.subr.bf16.mxu0 %v3451_v4 }
 0xa7a   :  { %3454 = vmatpush3.bf16.msra.mxu0 %v3451_v4 }
 0xb01   :  { %v1201_v55 = vpop.xlane.xlu1 %1200 }
 0xb02   :  { %v1203_v56 = vmul.f32 0.03125, %v1201_v55  ;;  %v1198_v57 = vpop.xlane.xlu0 %1197 }
 0xb03   :  { %v1202_v58 = vmul.f32 0.03125, %v1198_v57 }
 0xb04   :  { %v1205_v59 = vsub.f32 %v1195_v52, %v1203_v56 }
 0xb05   :  { %v1204_v60 = vsub.f32 %v1194_v53, %v1202_v58 }
 0xb06   :  { %v1207_v63 = vmul.f32 %v1205_v59, %v1205_v59 }
 0xb07   :  { %v1206_v61 = vmul.f32 %v1204_v60, %v1204_v60 }
 0xb08   :  { %v1211_v7 = vsel %vm284_vm7, %v1207_v63, 0.0 }
 0xb09   :  { %v1208_v62 = vsel %vm284_vm7, %v1206_v61, 0.0 }
 0xb0a   :  { %1209 = vadd.xlane.f32.xlu0 %v1208_v62 }
 0xb0e   :  { %1212 = vadd.xlane.f32.xlu0 %v1211_v7 }
 0xb97   :  { %v1210_v6 = vpop.xlane.xlu0 %1209 }
 0xb98   :  { %v1214_v8 = vmul.f32 0.03125, %v1210_v6 }
 0xb9a   :  { %v1216_v9 = vadd.f32 1e-12, %v1214_v8 }
 0xb9b   :  { %v1213_v10 = vpop.xlane.xlu0 %1212 }
 0xb9c   :  { %3561 = vrsqrt.f32 %v1216_v9  ;;  %v1215_v12 = vmul.f32 0.03125, %v1213_v10 }
 0xb9e   :  { %v1217_v14 = vadd.f32 1e-12, %v1215_v12 }
 0xba0   :  { %3563 = vrsqrt.f32 %v1217_v14 }
 0xba6   :  { %v3562_v17 = vpop.eup %3561 }
 0xba7   :  { %v1220_v21 = vmul.f32 %v3562_v17, %v1204_v60 }
 0xba9   :  { %v1226_v25 = vmul.f32 %v1225_v11, %v1220_v21 }
 0xbaa   :  { %v3564_v13 = vpop.eup %3563 }
 0xbab   :  { %v1221_v26 = vmul.f32 %v3564_v13, %v1205_v59  ;;  %v3984_v27 = vadd.f32 %v1231_v24, %v1226_v25 }
 0xbad   :  { %v1227_v28 = vmul.f32 %v1225_v11, %v1221_v26  ;;  %3272 = vmatprep.mubr.msk.f32.mxu0 %vm284_vm7, %v3984_v27 }
 0xbaf   :  { %v3988_v29 = vadd.f32 %v1231_v24, %v1227_v28 }
 0xbb1   :  { %3273 = vmatmul.mubr.msk.f32.vlgmr.msra.gmra.mrb[8].mxu0 %vm284_vm7, %v3988_v29 }
 0xc84   :  { %v3274_v43 = vpop.f32.mrb[8].mxu0 }
 0xc85   :  { %v1323_v45 = vadd.f32 %v3274_v43, %v3002_v41  ;;  %v1317_v46 = vpop.f32.mrb[9].mxu0 }
 0xc86   :  { %v1318_v47 = vadd.f32 %v3002_v41, %v1317_v46  ;;  %v3005_v41 = vld [vmem:[%s4297_s15] ss:$0 sm:$0xff] }
 0xc87   :  { %v1329_v49 = vmul.f32 0.70710677, %v1323_v45  ;;  %v1327_v38 = vmul.f32 0.5, %v1323_v45 }
 0xc88   :  { %v1328_v50 = vmul.f32 0.70710677, %v1318_v47  ;;  %v1326_v36 = vmul.f32 0.5, %v1318_v47 }
 0xc89   :  { %v1331_v51 = vand.u32 2147483647, %v1329_v49  ;;  %vm1371_vm11 = vcmp.ge.f32.partialorder %v1329_v49, 0.0 }
 0xc8a   :  { %v1330_v52 = vand.u32 2147483647, %v1328_v50  ;;  %vm1370_vm12 = vcmp.ge.f32.partialorder %v1328_v50, 0.0 }
 0xc8b   :  { %v1333_v53 = vmul.f32 0.3275911, %v1331_v51  ;;  %v1359_v56 = vsub.f32 0.0, %v1331_v51 }
 0xc8c   :  { %v1332_v42 = vmul.f32 0.3275911, %v1330_v52  ;;  %v1358_v57 = vsub.f32 0.0, %v1330_v52 }
 0xc8d   :  { %v1335_v54 = vadd.f32 1.0, %v1333_v53  ;;  %v1361_v59 = vmul.f32 %v1359_v56, %v1331_v51 }
 0xc8e   :  { %v1334_v55 = vadd.f32 1.0, %v1332_v42  ;;  %v1360_v62 = vmul.f32 %v1358_v57, %v1330_v52 }
 0xc8f   :  { %3565 = vrcp.f32 %v1335_v54  ;;  %v1364_v5 = vmul.f32 1.442695, %v1361_v59 }
 0xc90   :  { %3567 = vrcp.f32 %v1334_v55  ;;  %v1362_v2 = vmul.f32 1.442695, %v1360_v62 }
 0xc91   :  { %3569 = vpow2.f32 %v1364_v5 }
 0xc92   :  { %3571 = vpow2.f32 %v1362_v2 }
 0xc99   :  { %v3566_v58 = vpop.eup %3565 }
 0xc9a   :  { %v3568_v60 = vpop.eup %3567  ;;  %v1341_v61 = vmul.f32 1.0614054, %v3566_v58 }
 0xc9b   :  { %v1340_v63 = vmul.f32 1.0614054, %v3568_v60  ;;  %v3570_v24 = vpop.eup %3569 }
 0xc9c   :  { %v1343_v7 = vadd.f32 -1.4531521, %v1341_v61  ;;  %v3572_v13 = vpop.eup %3571  ;;  %v3009_v61 = vld [vmem:[%s4289_s7 + $0x28] sm:$0xff] }
 0xc9d   :  { %v1342_v0 = vadd.f32 -1.4531521, %v1340_v63  ;;  %v3010_v63 = vld [vmem:[%s4289_s7 + $0x30] sm:$0xff] }
 0xc9e   :  { %v1345_v1 = vmul.f32 %v3566_v58, %v1343_v7  ;;  %v3011_v7 = vld [vmem:[%s4289_s7 + $0x38] sm:$0xff] }
 0xc9f   :  { %v1344_v3 = vmul.f32 %v3568_v60, %v1342_v0  ;;  %v3475_v5 = vpack.c.bf16 %v3011_v7, %v3010_v63 }
 0xca0   :  { %v1347_v4 = vadd.f32 1.4214138, %v1345_v1 }
 0xca1   :  { %v1346_v6 = vadd.f32 1.4214138, %v1344_v3 }
 0xca2   :  { %v1349_v8 = vmul.f32 %v3566_v58, %v1347_v4 }
 0xca3   :  { %v1348_v9 = vmul.f32 %v3568_v60, %v1346_v6 }
 0xca4   :  { %v1351_v10 = vadd.f32 -0.28449672, %v1349_v8  ;;  %v1476_v8 = vld [vmem:[%s4298_s16] sm:$0x3] }
 0xca5   :  { %v1350_v12 = vadd.f32 -0.28449672, %v1348_v9  ;;  %v1508_v9 = vrot.slane %v1476_v8, %v3879_v22 }
 0xca6   :  { %v1353_v14 = vmul.f32 %v3566_v58, %v1351_v10 }
 0xca7   :  { %v1352_v15 = vmul.f32 %v3568_v60, %v1350_v12 }
 0xca8   :  { %v1355_v11 = vadd.f32 0.2548296, %v1353_v14 }
 0xca9   :  { %v1354_v17 = vadd.f32 0.2548296, %v1352_v15 }
 0xcaa   :  { %v1357_v21 = vmul.f32 %v3566_v58, %v1355_v11  ;;  %v1514_v11 = vrot.slane %v1476_v8, %v3910_v44 }
 0xcab   :  { %v1356_v25 = vmul.f32 %v3568_v60, %v1354_v17 }
 0xcac   :  { %v1367_v26 = vmul.f32 %v3570_v24, %v1357_v21 }
 0xcad   :  { %v1366_v28 = vmul.f32 %v3572_v13, %v1356_v25  ;;  %v3013_v13 = vld [vmem:[%s4290_s8 + $0x1] ss:$0 sm:$0xff] }
 0xcae   :  { %v1369_v19 = vsub.f32 1.0, %v1367_v26 }
 0xcaf   :  { %v1368_v30 = vsub.f32 1.0, %v1366_v28 }
 0xcb0   :  { %v1373_v31 = vsub.f32 0.0, %v1369_v19 }
 0xcb1   :  { %v1372_v32 = vsub.f32 0.0, %v1368_v30 }
 0xcb2   :  { %v1375_v33 = vsel %vm1371_vm11, %v1369_v19, %v1373_v31 }
 0xcb3   :  { %v1377_v34 = vadd.f32 1.0, %v1375_v33  ;;  %v1374_v35 = vsel %vm1370_vm12, %v1368_v30, %v1372_v32 }
 0xcb4   :  { %v1376_v37 = vadd.f32 1.0, %v1374_v35 }
 0xcb5   :  { %v1379_v40 = vmul.f32 %v1377_v34, %v1327_v38 }
 0xcb6   :  { %v1378_v39 = vmul.f32 %v1376_v37, %v1326_v36 }
 0xcb8   :  { %3291 = vmatprep.mubr.msk.f32.mxu1 %vm198_vm1, %v1378_v39 }
 0xcb9   :  { %3292 = vmatmul.mubr.msk.f32.vlgmr.msra.gmra.mrb[16].mxu1 %vm198_vm1, %v1379_v40 }
 0xcba   :  { %3317 = vmatprep.mubr.msk.f32.mxu1 %vm3635_vm8, %v3634_v18 }
 0xd8c   :  { %v3293_v43 = vpop.f32.mrb[16].mxu1 }
 0xd8d   :  { %v1473_v46 = vadd.f32 %v3293_v43, %v3005_v41  ;;  %v1467_v49 = vpop.f32.mrb[17].mxu1 }
 0xd8e   :  { %v1468_v50 = vadd.f32 %v3005_v41, %v1467_v49 }
 0xd8f   :  { %v1478_v47 = vadd.f32 %v1473_v46, %v3988_v29 }
 0xd90   :  { %v1477_v45 = vadd.f32 %v1468_v50, %v3984_v27  ;;  %v3008_v27 = vld [vmem:[%s4289_s7 + $0x20] sm:$0xff] }
 0xd91   :  { %v1482_v51 = vsel %vm284_vm7, %v1478_v47, 0.0  ;;  %v3471_v62 = vpack.c.bf16 %v3009_v61, %v3008_v27 }
 0xd92   :  { %1483 = vadd.xlane.f32.xlu0 %v1482_v51  ;;  %v1479_v52 = vsel %vm284_vm7, %v1477_v45, 0.0 }
 0xd93   :  { %1480 = vadd.xlane.f32.xlu1 %v1479_v52  ;;  %3472 = vmatprep.subr.bf16.mxu0 %v3471_v62 }
 0xd94   :  { %3474 = vmatpush3.bf16.msra.mxu0 %v3471_v62 }
 0xd95   :  { %3476 = vmatprep.subr.bf16.mxu0 %v3475_v5 }
 0xd98   :  { %3478 = vmatpush3.bf16.msra.mxu0 %v3475_v5 }
 0xd99   :  { %3305 = vmatprep.subr.mxu0 %v3634_v18 }
 0xe1f   :  { %v1484_v53 = vpop.xlane.xlu0 %1483 }
 0xe20   :  { %v1486_v42 = vmul.f32 0.03125, %v1484_v53  ;;  %v1481_v54 = vpop.xlane.xlu1 %1480 }
 0xe21   :  { %v1485_v55 = vmul.f32 0.03125, %v1481_v54 }
 0xe22   :  { %v1488_v56 = vsub.f32 %v1478_v47, %v1486_v42 }
 0xe23   :  { %v1487_v57 = vsub.f32 %v1477_v45, %v1485_v55 }
 0xe24   :  { %v1490_v58 = vmul.f32 %v1488_v56, %v1488_v56 }
 0xe25   :  { %v1489_v59 = vmul.f32 %v1487_v57, %v1487_v57 }
 0xe26   :  { %v1494_v60 = vsel %vm284_vm7, %v1490_v58, 0.0 }
 0xe27   :  { %1495 = vadd.xlane.f32.xlu0 %v1494_v60  ;;  %v1491_v29 = vsel %vm284_vm7, %v1489_v59, 0.0 }
 0xe28   :  { %1492 = vadd.xlane.f32.xlu1 %v1491_v29 }
 0xeb4   :  { %v1496_v0 = vpop.xlane.xlu0 %1495 }
 0xeb5   :  { %v1498_v1 = vmul.f32 0.03125, %v1496_v0  ;;  %v1493_v2 = vpop.xlane.xlu1 %1492 }
 0xeb6   :  { %v1497_v3 = vmul.f32 0.03125, %v1493_v2 }
 0xeb7   :  { %v1500_v4 = vadd.f32 1e-12, %v1498_v1 }
 0xeb8   :  { %v1499_v6 = vadd.f32 1e-12, %v1497_v3 }
 0xeb9   :  { %3573 = vrsqrt.f32 %v1500_v4 }
 0xeba   :  { %3575 = vrsqrt.f32 %v1499_v6 }
 0xec3   :  { %v3574_v10 = vpop.eup %3573 }
 0xec4   :  { %v3576_v12 = vpop.eup %3575  ;;  %v1504_v14 = vmul.f32 %v3574_v10, %v1488_v56 }
 0xec5   :  { %v1503_v15 = vmul.f32 %v3576_v12, %v1487_v57 }
 0xec6   :  { %v1510_v17 = vmul.f32 %v1508_v9, %v1504_v14 }
 0xec7   :  { %v1509_v21 = vmul.f32 %v1508_v9, %v1503_v15 }
 0xec8   :  { %v4053_v25 = vadd.f32 %v1514_v11, %v1510_v17 }
 0xec9   :  { %v4051_v24 = vadd.f32 %v1514_v11, %v1509_v21 }
 0xecb   :  { %3302 = vmatprep.mubr.msk.f32.mxu0 %vm284_vm7, %v4051_v24 }
 0xecc   :  { %3303 = vmatmul.mubr.msk.f32.vlgmr.msra.gmra.mrb[10].mxu0 %vm284_vm7, %v4053_v25 }
 0xecd   :  { %3307 = vmatprep.mubr.msk.f32.mxu0 %vm3635_vm8, %v3634_v18 }
 0xf9f   :  { %v3304_v26 = vpop.f32.mrb[10].mxu0 }
 0xfa0   :  { %v1602_v28 = vpop.f32.mrb[11].mxu0  ;;  %v4070_v30 = vadd.f32 %v3304_v26, %v3013_v13 }
 0xfa1   :  { %v4064_v19 = vadd.f32 %v3013_v13, %v1602_v28 }
 0xfa2   :  { %v1947_v32 = vmul.f32 0.25, %v4070_v30 }
 0xfa3   :  { %1779 = vrot.lane.b32.xlu0 %v4064_v19, %s3637_s4  ;;  %1613 = vrot.lane.b32.xlu1 %v4064_v19, %s3636_s30  ;;  %v1611_v31 = vmul.f32 0.25, %v4064_v19 }
 0xfa7   :  { %2115 = vrot.lane.b32.xlu0 %v4070_v30, %s3637_s4  ;;  %1777 = vrot.lane.b32.xlu1 %v1611_v31, %s3638_s0 }
 0xfab   :  { %1949 = vrot.lane.b32.xlu1 %v4070_v30, %s3636_s30 }
 0xfaf   :  { %2113 = vrot.lane.b32.xlu1 %v1947_v32, %s3638_s0 }
0x1015   :  { %v1780_v33 = vpop.permute.xlu0 %1779  ;;  %v1614_v34 = vpop.permute.xlu1 %1613 }
0x1016   :  { %3306 = vmatpush3.xpose.msk.msra.mxu0 %vm427_vm9, %v1614_v34  ;;  %3316 = vmatpush3.xpose.msk.msra.mxu1 %vm427_vm9, %v1780_v33  ;;  %v3028_v34 = vld [vmem:[%s4291_s9 + $0x20] sm:$0xff] }
0x1017   :  { %3325 = vmatprep.subr.mxu1 %v3634_v18  ;;  %3310 = vmatprep.subr.mxu0 %v3634_v18 }
0x1019   :  { %v1778_v35 = vpop.permute.xlu1 %1777  ;;  %3308 = vmatmul.mubr.msk.f32.vlgmr.msra.gmra.mrb[12].mxu0 %vm427_vm9, %v1611_v31  ;;  %v2116_v37 = vpop.permute.xlu0 %2115 }
0x101a   :  { %3318 = vmatmul.mubr.msk.f32.vlgmr.msra.gmra.mrb[18].mxu1 %vm427_vm9, %v1778_v35  ;;  %3312 = vmatprep.mubr.msk.f32.mxu0 %vm3635_vm8, %v3634_v18  ;;  %v3029_v35 = vld [vmem:[%s4291_s9 + $0x28] sm:$0xff] }
0x101b   :  { %3327 = vmatprep.mubr.msk.f32.mxu1 %vm3635_vm8, %v3634_v18 }
0x101d   :  { %v1950_v36 = vpop.permute.xlu1 %1949 }
0x101e   :  { %3326 = vmatpush3.xpose.msk.msra.mxu1 %vm427_vm9, %v1950_v36  ;;  %v3479_v36 = vpack.c.bf16 %v3029_v35, %v3028_v34  ;;  %v3045_v35 = vld [vmem:[%s4296_s14 + $0x40] sm:$0xff] }
0x101f   :  { %3335 = vmatprep.subr.mxu1 %v3634_v18 }
0x1021   :  { %3328 = vmatmul.mubr.msk.f32.vlgmr.msra.gmra.mrb[20].mxu1 %vm427_vm9, %v1947_v32  ;;  %v2114_v38 = vpop.permute.xlu1 %2113 }
0x1022   :  { %3336 = vmatpush3.xpose.msk.msra.mxu1 %vm427_vm9, %v2116_v37  ;;  %3337 = vmatprep.mubr.msk.f32.mxu1 %vm3635_vm8, %v3634_v18  ;;  %v3030_v37 = vld [vmem:[%s4291_s9 + $0x30] sm:$0xff] }
0x1023   :  { %3480 = vmatprep.subr.bf16.mxu1 %v3479_v36 }
0x1025   :  { %3338 = vmatmul.mubr.msk.f32.vlgmr.msra.gmra.mrb[22].mxu1 %vm427_vm9, %v2114_v38  ;;  %v3031_v38 = vld [vmem:[%s4291_s9 + $0x38] sm:$0xff] }
0x1026   :  { %3482 = vmatpush3.bf16.msra.mxu1 %v3479_v36  ;;  %v3046_v36 = vld [vmem:[%s4296_s14 + $0x48] sm:$0xff] }
0x10ec   :  { %v1686_v39 = vpop.f32.mrb[12].mxu0 }
0x10ed   :  { %v1687_v40 = vadd.f32 %v1686_v39, %v3882_v23  ;;  %v3309_v41 = vpop.f32.mrb[13].mxu0  ;;  %v1851_v43 = vpop.f32.mrb[18].mxu1  ;;  %v3483_v39 = vpack.c.bf16 %v3031_v38, %v3030_v37  ;;  %v3495_v37 = vpack.c.bf16 %v3046_v36, %v3045_v35  ;;  %v3047_v38 = vld [vmem:[%s4296_s14 + $0x50] sm:$0xff] }
0x10ee   :  { %v1852_v46 = vadd.f32 %v1851_v43, %v3882_v23  ;;  %v3319_v49 = vpop.f32.mrb[19].mxu1 }
0x10ef   :  { %v1690_v50 = vsel %vm503_vm10, %v1687_v40, -inf  ;;  %3484 = vmatprep.subr.bf16.mxu1 %v3483_v39 }
0x10f0   :  { %1691 = vmax.xlane.f32.xlu0 %v1690_v50  ;;  %v1855_v47 = vsel %vm503_vm10, %v1852_v46, -inf  ;;  %3486 = vmatpush3.bf16.msra.mxu1 %v3483_v39  ;;  %v3048_v39 = vld [vmem:[%s4296_s14 + $0x58] sm:$0xff] }
0x10f1   :  { %1856 = vmax.xlane.f32.xlu1 %v1855_v47  ;;  %3496 = vmatprep.subr.bf16.mxu1 %v3495_v37 }
0x10f4   :  { %v2022_v45 = vpop.f32.mrb[20].mxu1 }
0x10f5   :  { %v2023_v51 = vadd.f32 %v2022_v45, %v3914_v48  ;;  %v3329_v52 = vpop.f32.mrb[21].mxu1 }
0x10f7   :  { %v2026_v53 = vsel %vm503_vm10, %v2023_v51, -inf }
0x10f8   :  { %v2187_v42 = vpop.f32.mrb[22].mxu1  ;;  %2027 = vmax.xlane.f32.xlu0 %v2026_v53 }
0x10f9   :  { %v2188_v54 = vadd.f32 %v2187_v42, %v3914_v48  ;;  %v3339_v55 = vpop.f32.mrb[23].mxu1 }
0x10fb   :  { %v2191_v23 = vsel %vm503_vm10, %v2188_v54, -inf }
0x10fc   :  { %2192 = vmax.xlane.f32.xlu0 %v2191_v23 }
0x1102   :  { %1701 = vrot.lane.b32.xlu1 %v4064_v19, %s3639_s6 }
0x117d   :  { %v1692_v56 = vpop.xlane.xlu0 %1691 }
0x117e   :  { %v1693_v57 = vsub.f32 %v1687_v40, %v1692_v56  ;;  %v1857_v58 = vpop.xlane.xlu1 %1856 }
0x117f   :  { %v1858_v59 = vsub.f32 %v1852_v46, %v1857_v58 }
0x1180   :  { %v1694_v60 = vmul.f32 1.442695, %v1693_v57 }
0x1181   :  { %v1859_v29 = vmul.f32 1.442695, %v1858_v59 }
0x1182   :  { %3577 = vpow2.f32 %v1694_v60  ;;  %v1702_v27 = vpop.permute.xlu1 %1701 }
0x1183   :  { %3579 = vpow2.f32 %v1859_v29  ;;  %3311 = vmatpush3.msra.mxu0 %v1702_v27 }
0x1184   :  { %3320 = vmatprep.subr.mxu0 %v3634_v18 }
0x1185   :  { %v2028_v48 = vpop.xlane.xlu0 %2027 }
0x1186   :  { %v2029_v61 = vsub.f32 %v2023_v51, %v2028_v48 }
0x1188   :  { %v2030_v62 = vmul.f32 1.442695, %v2029_v61 }
0x1189   :  { %v2193_v63 = vpop.xlane.xlu0 %2192 }
0x118a   :  { %3581 = vpow2.f32 %v2030_v62  ;;  %v2194_v7 = vsub.f32 %v2188_v54, %v2193_v63  ;;  %v3033_v54 = vld [vmem:[%s4292_s10 + $0x1] ss:$0 sm:$0xff] }
0x118c   :  { %v3578_v5 = vpop.eup %3577  ;;  %v2195_v0 = vmul.f32 1.442695, %v2194_v7 }
0x118d   :  { %v3580_v1 = vpop.eup %3579  ;;  %v1696_v2 = vsel %vm503_vm10, %v3578_v5, 0.0 }
0x118e   :  { %3583 = vpow2.f32 %v2195_v0  ;;  %1697 = vadd.xlane.f32.xlu1 %v1696_v2  ;;  %v1861_v3 = vsel %vm503_vm10, %v3580_v1, 0.0  ;;  %v3038_v2 = vld [vmem:[%s4294_s12 + $0x28] sm:$0xff] }
0x118f   :  { %1862 = vadd.xlane.f32.xlu0 %v1861_v3 }
0x1194   :  { %v3582_v4 = vpop.eup %3581 }
0x1195   :  { %v2032_v6 = vsel %vm503_vm10, %v3582_v4, 0.0 }
0x1196   :  { %2033 = vadd.xlane.f32.xlu1 %v2032_v6  ;;  %v3040_v6 = vld [vmem:[%s4294_s12 + $0x38] sm:$0xff] }
0x1198   :  { %v3584_v8 = vpop.eup %3583 }
0x1199   :  { %v2197_v9 = vsel %vm503_vm10, %v3584_v8, 0.0 }
0x119a   :  { %2198 = vadd.xlane.f32.xlu0 %v2197_v9 }
0x11a7   :  { %2037 = vrot.lane.b32.xlu1 %v4070_v30, %s3639_s6 }
0x11ab   :  { %2202 = vrot.lane.b32.xlu1 %v4070_v30, %s3640_s25 }
0x11b0   :  { %1866 = vrot.lane.b32.xlu0 %v4064_v19, %s3640_s25 }
0x121b   :  { %v1698_v10 = vpop.xlane.xlu1 %1697 }
0x121c   :  { %3585 = vrcp.f32 %v1698_v10  ;;  %v1863_v12 = vpop.xlane.xlu0 %1862 }
0x121d   :  { %3587 = vrcp.f32 %v1863_v12 }
0x1223   :  { %v2034_v14 = vpop.xlane.xlu1 %2033 }
0x1224   :  { %3589 = vrcp.f32 %v2034_v14 }
0x1226   :  { %v3586_v15 = vpop.eup %3585 }
0x1227   :  { %v1700_v11 = vmul.f32 %v3586_v15, %v3578_v5  ;;  %v2199_v17 = vpop.xlane.xlu0 %2198  ;;  %v3588_v21 = vpop.eup %3587 }
0x1228   :  { %3591 = vrcp.f32 %v2199_v17  ;;  %v1865_v13 = vmul.f32 %v3588_v21, %v3580_v1  ;;  %v2038_v26 = vpop.permute.xlu1 %2037  ;;  %v3036_v17 = vld [vmem:[%s4293_s11 + $0x2] sm:$0x3] }
0x1229   :  { %3313 = vmatmul.mubr.msk.f32.vlgmr.msra.gmra.mrb[14].mxu0 %vm503_vm10, %v1700_v11  ;;  %v2410_v21 = vrot.slane %v3036_v17, %v3879_v22 }
0x122a   :  { %3322 = vmatprep.mubr.msk.f32.mxu0 %vm3635_vm8, %v3634_v18 }
0x122b   :  { %v1867_v28 = vpop.permute.xlu0 %1866 }
0x122c   :  { %3321 = vmatpush3.msra.mxu0 %v1867_v28  ;;  %v2203_v31 = vpop.permute.xlu1 %2202  ;;  %v2416_v28 = vrot.slane %v3036_v17, %v3910_v44 }
0x122d   :  { %3323 = vmatmul.mubr.msk.f32.vlgmr.msra.gmra.mrb[16].mxu0 %vm503_vm10, %v1865_v13  ;;  %3330 = vmatprep.subr.mxu0 %v3634_v18 }
0x122e   :  { %v3590_v19 = vpop.eup %3589  ;;  %3331 = vmatpush3.msra.mxu0 %v2038_v26  ;;  %3332 = vmatprep.mubr.msk.f32.mxu0 %vm3635_vm8, %v3634_v18 }
0x122f   :  { %v2036_v30 = vmul.f32 %v3590_v19, %v3582_v4  ;;  %3340 = vmatprep.subr.mxu0 %v3634_v18  ;;  %v3039_v4 = vld [vmem:[%s4294_s12 + $0x30] sm:$0xff] }
0x1231   :  { %3333 = vmatmul.mubr.msk.f32.vlgmr.msra.gmra.mrb[18].mxu0 %vm503_vm10, %v2036_v30 }
0x1232   :  { %v3592_v32 = vpop.eup %3591  ;;  %3341 = vmatpush3.msra.mxu0 %v2203_v31  ;;  %3342 = vmatprep.mubr.msk.f32.mxu0 %vm3635_vm8, %v3634_v18 }
0x1233   :  { %v2201_v33 = vmul.f32 %v3592_v32, %v3584_v8  ;;  %v3491_v8 = vpack.c.bf16 %v3040_v6, %v3039_v4 }
0x1235   :  { %3343 = vmatmul.mubr.msk.f32.vlgmr.msra.gmra.mrb[20].mxu0 %vm503_vm10, %v2201_v33 }
0x12fc   :  { %v1773_v40 = vpop.f32.mrb[14].mxu0 }
0x12fd   :  { %v3314_v41 = vpop.f32.mrb[15].mxu0 }
0x12fe   :  { %v3049_v41 = vld [vmem:[%s4296_s14 + $0x60] sm:$0xff] }
0x1300   :  { %v1938_v43 = vpop.f32.mrb[16].mxu0 }
0x1301   :  { %1943 = vrot.lane.b32.xlu0 %v1938_v43, %s3641_s5  ;;  %v3324_v46 = vpop.f32.mrb[17].mxu0  ;;  %v3050_v43 = vld [vmem:[%s4296_s14 + $0x68] sm:$0xff] }
0x1302   :  { %v3503_v46 = vpack.c.bf16 %v3050_v43, %v3049_v41 }
0x1304   :  { %v2109_v49 = vpop.f32.mrb[18].mxu0 }
0x1305   :  { %v3334_v50 = vpop.f32.mrb[19].mxu0 }
0x1306   :  { %v3052_v50 = vld [vmem:[%s4296_s14 + $0x78] sm:$0xff] }
0x1308   :  { %v2274_v47 = vpop.f32.mrb[20].mxu0 }
0x1309   :  { %2279 = vrot.lane.b32.xlu1 %v2274_v47, %s3641_s5  ;;  %v3344_v45 = vpop.f32.mrb[21].mxu0 }
0x130a   :  { %v3042_v45 = vld [vmem:[%s4295_s13 + $0x1] ss:$0 sm:$0xff]  ;;  %s2965_s13 = sshll.u32 %s3643_s1, 4  ;;  %s2966_s13 = int_to_ptr.vmem [resolvable:$true] %s2965_s13 }
0x130b   :  { %p3614_p1 = scmp.lt.s32.totalorder %s2966_s13, %s2966_s13 }
0x1373   :  { %v1944_v51 = vpop.permute.xlu0 %1943 }
0x1374   :  { %v1946_v52 = vsel %vm427_vm9, %v1773_v40, %v1944_v51  ;;  %v3499_v40 = vpack.c.bf16 %v3048_v39, %v3047_v38 }
0x1375   :  { %3353 = vmatprep.mubr.msk.f32.mxu1 %vm284_vm7, %v1946_v52 }
0x137b   :  { %v2280_v53 = vpop.permute.xlu1 %2279 }
0x137c   :  { %v2282_v42 = vsel %vm427_vm9, %v2109_v49, %v2280_v53  ;;  %v3051_v49 = vld [vmem:[%s4296_s14 + $0x70] sm:$0xff] }
0x137d   :  { %3354 = vmatmul.mubr.msk.f32.vlgmr.msra.gmra.mrb[24].mxu1 %vm284_vm7, %v2282_v42  ;;  %v3507_v47 = vpack.c.bf16 %v3052_v50, %v3051_v49  ;;  %v3054_v50 = vld [vmem:[%s4297_s15 + $0x1] ss:$0 sm:$0xff] }
0x137e   :  { %3498 = vmatpush3.bf16.msra.mxu1 %v3495_v37 }
0x137f   :  { %3500 = vmatprep.subr.bf16.mxu1 %v3499_v40 }
0x1382   :  { %3502 = vmatpush3.bf16.msra.mxu1 %v3499_v40 }
0x1383   :  { %3504 = vmatprep.subr.bf16.mxu1 %v3503_v46 }
0x1386   :  { %3506 = vmatpush3.bf16.msra.mxu1 %v3503_v46 }
0x1387   :  { %3508 = vmatprep.subr.bf16.mxu1 %v3507_v47 }
0x138a   :  { %3510 = vmatpush3.bf16.msra.mxu1 %v3507_v47 }
0x1450   :  { %v3355_v55 = vpop.f32.mrb[24].mxu1 }
0x1451   :  { %v2374_v23 = vadd.f32 %v3355_v55, %v3033_v54  ;;  %v2368_v56 = vpop.f32.mrb[25].mxu1 }
0x1452   :  { %v2369_v57 = vadd.f32 %v3033_v54, %v2368_v56 }
0x1453   :  { %v2380_v58 = vadd.f32 %v2374_v23, %v4053_v25 }
0x1454   :  { %v2379_v59 = vadd.f32 %v2369_v57, %v4051_v24  ;;  %v3037_v24 = vld [vmem:[%s4294_s12 + $0x20] sm:$0xff] }
0x1455   :  { %v2384_v60 = vsel %vm284_vm7, %v2380_v58, 0.0  ;;  %v3487_v3 = vpack.c.bf16 %v3038_v2, %v3037_v24 }
0x1456   :  { %2385 = vadd.xlane.f32.xlu1 %v2384_v60  ;;  %v2381_v29 = vsel %vm284_vm7, %v2379_v59, 0.0 }
0x1457   :  { %2382 = vadd.xlane.f32.xlu0 %v2381_v29  ;;  %3488 = vmatprep.subr.bf16.mxu0 %v3487_v3 }
0x1458   :  { %3490 = vmatpush3.bf16.msra.mxu0 %v3487_v3 }
0x1459   :  { %3492 = vmatprep.subr.bf16.mxu0 %v3491_v8 }
0x145c   :  { %3494 = vmatpush3.bf16.msra.mxu0 %v3491_v8 }
0x14e3   :  { %v2386_v27 = vpop.xlane.xlu1 %2385 }
0x14e4   :  { %v2388_v48 = vmul.f32 0.03125, %v2386_v27  ;;  %v2383_v61 = vpop.xlane.xlu0 %2382 }
0x14e5   :  { %v2387_v62 = vmul.f32 0.03125, %v2383_v61 }
0x14e6   :  { %v2390_v63 = vsub.f32 %v2380_v58, %v2388_v48 }
0x14e7   :  { %v2389_v7 = vsub.f32 %v2379_v59, %v2387_v62 }
0x14e8   :  { %v2392_v1 = vmul.f32 %v2390_v63, %v2390_v63 }
0x14e9   :  { %v2391_v5 = vmul.f32 %v2389_v7, %v2389_v7 }
0x14ea   :  { %v2396_v25 = vsel %vm284_vm7, %v2392_v1, 0.0 }
0x14eb   :  { %v2393_v0 = vsel %vm284_vm7, %v2391_v5, 0.0 }
0x14ec   :  { %2394 = vadd.xlane.f32.xlu0 %v2393_v0 }
0x14f0   :  { %2397 = vadd.xlane.f32.xlu0 %v2396_v25 }
0x1579   :  { %v2395_v9 = vpop.xlane.xlu0 %2394 }
0x157a   :  { %v2399_v10 = vmul.f32 0.03125, %v2395_v9 }
0x157c   :  { %v2401_v12 = vadd.f32 1e-12, %v2399_v10 }
0x157d   :  { %v2398_v14 = vpop.xlane.xlu0 %2397 }
0x157e   :  { %3593 = vrsqrt.f32 %v2401_v12  ;;  %v2400_v15 = vmul.f32 0.03125, %v2398_v14 }
0x1580   :  { %v2402_v11 = vadd.f32 1e-12, %v2400_v15 }
0x1582   :  { %3595 = vrsqrt.f32 %v2402_v11 }
0x1588   :  { %v3594_v13 = vpop.eup %3593 }
0x1589   :  { %v2405_v26 = vmul.f32 %v3594_v13, %v2389_v7 }
0x158b   :  { %v2411_v19 = vmul.f32 %v2410_v21, %v2405_v26 }
0x158c   :  { %v3596_v30 = vpop.eup %3595 }
0x158d   :  { %v2406_v31 = vmul.f32 %v3596_v30, %v2390_v63  ;;  %v4174_v32 = vadd.f32 %v2416_v28, %v2411_v19 }
0x158f   :  { %v2412_v33 = vmul.f32 %v2410_v21, %v2406_v31  ;;  %3364 = vmatprep.mubr.msk.f32.mxu0 %vm284_vm7, %v4174_v32 }
0x1591   :  { %v4178_v34 = vadd.f32 %v2416_v28, %v2412_v33 }
0x1593   :  { %3365 = vmatmul.mubr.msk.f32.vlgmr.msra.gmra.mrb[22].mxu0 %vm284_vm7, %v4178_v34 }
0x1594   :  { %3390 = vmatprep.mubr.msk.f32.mxu0 %vm3635_vm8, %v3634_v18 }
0x1666   :  { %v3366_v51 = vpop.f32.mrb[22].mxu0 }
0x1667   :  { %v2510_v52 = vadd.f32 %v3366_v51, %v3042_v45  ;;  %v2504_v53 = vpop.f32.mrb[23].mxu0 }
0x1668   :  { %v2505_v42 = vadd.f32 %v3042_v45, %v2504_v53 }
0x1669   :  { %v2516_v54 = vmul.f32 0.70710677, %v2510_v52  ;;  %v2514_v43 = vmul.f32 0.5, %v2510_v52 }
0x166a   :  { %v2515_v55 = vmul.f32 0.70710677, %v2505_v42  ;;  %v2513_v40 = vmul.f32 0.5, %v2505_v42 }
0x166b   :  { %v2518_v23 = vand.u32 2147483647, %v2516_v54  ;;  %vm2558_vm13 = vcmp.ge.f32.partialorder %v2516_v54, 0.0 }
0x166c   :  { %v2517_v56 = vand.u32 2147483647, %v2515_v55  ;;  %vm2557_vm14 = vcmp.ge.f32.partialorder %v2515_v55, 0.0 }
0x166d   :  { %v2520_v57 = vmul.f32 0.3275911, %v2518_v23  ;;  %v2546_v29 = vsub.f32 0.0, %v2518_v23 }
0x166e   :  { %v2519_v58 = vmul.f32 0.3275911, %v2517_v56  ;;  %v2545_v27 = vsub.f32 0.0, %v2517_v56 }
0x166f   :  { %v2522_v59 = vadd.f32 1.0, %v2520_v57  ;;  %v2548_v61 = vmul.f32 %v2546_v29, %v2518_v23 }
0x1670   :  { %v2521_v60 = vadd.f32 1.0, %v2519_v58  ;;  %v2547_v7 = vmul.f32 %v2545_v27, %v2517_v56 }
0x1671   :  { %3597 = vrcp.f32 %v2522_v59  ;;  %v2551_v1 = vmul.f32 1.442695, %v2548_v61 }
0x1672   :  { %3599 = vrcp.f32 %v2521_v60  ;;  %v2549_v2 = vmul.f32 1.442695, %v2547_v7 }
0x1673   :  { %3601 = vpow2.f32 %v2551_v1  ;;  %v3057_v1 = vld [vmem:[%s4298_s16 + $0x2] sm:$0x3] }
0x1674   :  { %3603 = vpow2.f32 %v2549_v2 }
0x167b   :  { %v3598_v48 = vpop.eup %3597 }
0x167c   :  { %v3600_v62 = vpop.eup %3599  ;;  %v2528_v63 = vmul.f32 1.0614054, %v3598_v48 }
0x167d   :  { %v2527_v5 = vmul.f32 1.0614054, %v3600_v62  ;;  %v3602_v13 = vpop.eup %3601 }
0x167e   :  { %v2530_v0 = vadd.f32 -1.4531521, %v2528_v63  ;;  %v3604_v28 = vpop.eup %3603 }
0x167f   :  { %v2529_v25 = vadd.f32 -1.4531521, %v2527_v5 }
0x1680   :  { %v2532_v24 = vmul.f32 %v3598_v48, %v2530_v0 }
0x1681   :  { %v2531_v3 = vmul.f32 %v3600_v62, %v2529_v25  ;;  %v2698_v25 = vrot.slane %v3057_v1, %v3879_v22  ;;  %v2789_v22 = vld [vmem:[%s4300_s18 + $0x8] sm:$0xff] }
0x1682   :  { %v2534_v4 = vadd.f32 1.4214138, %v2532_v24 }
0x1683   :  { %v2533_v6 = vadd.f32 1.4214138, %v2531_v3 }
0x1684   :  { %v2536_v8 = vmul.f32 %v3598_v48, %v2534_v4  ;;  %v2704_v4 = vrot.slane %v3057_v1, %v3910_v44 }
0x1685   :  { %v2535_v9 = vmul.f32 %v3600_v62, %v2533_v6 }
0x1686   :  { %v2538_v10 = vadd.f32 -0.28449672, %v2536_v8 }
0x1687   :  { %v2537_v12 = vadd.f32 -0.28449672, %v2535_v9  ;;  %v2709_v9 = vmul.u32 8, %v3876_v16  ;;  %v2791_v16 = vld [vmem:[%s4300_s18 + $0x18] sm:$0xff] }
0x1688   :  { %v2540_v14 = vmul.f32 %v3598_v48, %v2538_v10 }
0x1689   :  { %v2539_v15 = vmul.f32 %v3600_v62, %v2537_v12  ;;  %vm2710_vm15 = vcmp.eq.s32.totalorder %v3800_v20, %v2709_v9  ;;  %v2790_v20 = vld [vmem:[%s4300_s18 + $0x10] sm:$0xff] }
0x168a   :  { %v2542_v11 = vadd.f32 0.2548296, %v2540_v14  ;;  %v3058_v44 = vsel %vm2710_vm15, 1.0, %v3634_v18 }
0x168b   :  { %v2541_v17 = vadd.f32 0.2548296, %v2539_v15  ;;  %v2788_v15 = vld [vmem:[%s4300_s18] sm:$0xff] }
0x168c   :  { %v2544_v21 = vmul.f32 %v3598_v48, %v2542_v11 }
0x168d   :  { %v2543_v26 = vmul.f32 %v3600_v62, %v2541_v17  ;;  %v3515_v17 = vpack.c.bf16 %v2789_v22, %v2788_v15 }
0x168e   :  { %v2554_v19 = vmul.f32 %v3602_v13, %v2544_v21  ;;  %v3518_v21 = vpack.c.bf16 %v2791_v16, %v2790_v20  ;;  %v2873_v13 = vld [vmem:[%s4302_s20] sm:$0xff] }
0x168f   :  { %v2553_v30 = vmul.f32 %v3604_v28, %v2543_v26  ;;  %v2874_v26 = vld [vmem:[%s4302_s20 + $0x8] sm:$0xff]  ;;  %v2786_v28 = vld [vmem:[%s4299_s17] sm:$0x3] }
0x1690   :  { %v2556_v31 = vsub.f32 1.0, %v2554_v19 }
0x1691   :  { %v2555_v33 = vsub.f32 1.0, %v2553_v30  ;;  %v3521_v30 = vpack.c.bf16 %v2874_v26, %v2873_v13 }
0x1692   :  { %v2560_v35 = vsub.f32 0.0, %v2556_v31 }
0x1693   :  { %v2559_v36 = vsub.f32 0.0, %v2555_v33 }
0x1694   :  { %v2562_v37 = vsel %vm2558_vm13, %v2556_v31, %v2560_v35  ;;  %v2875_v35 = vld [vmem:[%s4302_s20 + $0x10] sm:$0xff] }
0x1695   :  { %v2564_v38 = vadd.f32 1.0, %v2562_v37  ;;  %v2561_v39 = vsel %vm2557_vm14, %v2555_v33, %v2559_v36  ;;  %v2876_v36 = vld [vmem:[%s4302_s20 + $0x18] sm:$0xff]  ;;  %s3609_s20 = scalar_lea.vmem %s2966_s13, 32 }
0x1696   :  { %v2563_v41 = vadd.f32 1.0, %v2561_v39  ;;  %v3524_v37 = vpack.c.bf16 %v2876_v36, %v2875_v35  ;;  %p3610_p0 = scmp.ne.s32.totalorder %s2966_s13, %s3609_s20  ;;  %p3615_p2 = scmp.lt.s32.totalorder %s3609_s20, %s3609_s20 }
0x1697   :  { %v2566_v49 = vmul.f32 %v2564_v38, %v2514_v43  ;;  %v3060_v38 = vld [vmem:[%s4301_s19] ss:$0 sm:$0xff] }
0x1698   :  { %v2565_v46 = vmul.f32 %v2563_v41, %v2513_v40  ;;  %p3616_p3 = por %p3615_p2, %p3614_p1 }
0x169a   :  { %3383 = vmatprep.mubr.msk.f32.mxu1 %vm198_vm1, %v2565_v46  ;;  %p3617_p4 = pnand %p3616_p3, %p3610_p0 }
0x169b   :  { %3384 = vmatmul.mubr.msk.f32.vlgmr.msra.gmra.mrb[26].mxu1 %vm198_vm1, %v2566_v49 }
0x176e   :  { %v3385_v47 = vpop.f32.mrb[26].mxu1 }
0x176f   :  { %v2662_v45 = vadd.f32 %v3385_v47, %v3054_v50  ;;  %v2656_v51 = vpop.f32.mrb[27].mxu1 }
0x1770   :  { %v2657_v53 = vadd.f32 %v3054_v50, %v2656_v51 }
0x1771   :  { %v2668_v54 = vadd.f32 %v2662_v45, %v4178_v34 }
0x1772   :  { %v2667_v42 = vadd.f32 %v2657_v53, %v4174_v32  ;;  %v3642_v32 = vmov 0.0|0.0  }
0x1773   :  { %v2672_v52 = vsel %vm284_vm7, %v2668_v54, 0.0  ;;  %3511 = vmatprep.subr.bf16.mxu0 %v3642_v32 }
0x1774   :  { %2673 = vadd.xlane.f32.xlu0 %v2672_v52  ;;  %v2669_v55 = vsel %vm284_vm7, %v2667_v42, 0.0 }
0x1775   :  { %2670 = vadd.xlane.f32.xlu1 %v2669_v55 }
0x1801   :  { %v2674_v23 = vpop.xlane.xlu0 %2673 }
0x1802   :  { %v2676_v56 = vmul.f32 0.03125, %v2674_v23  ;;  %v2671_v57 = vpop.xlane.xlu1 %2670 }
0x1803   :  { %v2675_v58 = vmul.f32 0.03125, %v2671_v57 }
0x1804   :  { %v2678_v59 = vsub.f32 %v2668_v54, %v2676_v56 }
0x1805   :  { %v2677_v60 = vsub.f32 %v2667_v42, %v2675_v58 }
0x1806   :  { %v2680_v29 = vmul.f32 %v2678_v59, %v2678_v59 }
0x1807   :  { %v2679_v27 = vmul.f32 %v2677_v60, %v2677_v60 }
0x1808   :  { %v2684_v48 = vsel %vm284_vm7, %v2680_v29, 0.0 }
0x1809   :  { %2685 = vadd.xlane.f32.xlu0 %v2684_v48  ;;  %v2681_v34 = vsel %vm284_vm7, %v2679_v27, 0.0 }
0x180a   :  { %2682 = vadd.xlane.f32.xlu1 %v2681_v34 }
0x1896   :  { %v2686_v61 = vpop.xlane.xlu0 %2685 }
0x1897   :  { %v2688_v62 = vmul.f32 0.03125, %v2686_v61  ;;  %v2683_v63 = vpop.xlane.xlu1 %2682 }
0x1898   :  { %v2687_v7 = vmul.f32 0.03125, %v2683_v63 }
0x1899   :  { %v2690_v5 = vadd.f32 1e-12, %v2688_v62 }
0x189a   :  { %v2689_v0 = vadd.f32 1e-12, %v2687_v7 }
0x189b   :  { %3605 = vrsqrt.f32 %v2690_v5 }
0x189c   :  { %3607 = vrsqrt.f32 %v2689_v0 }
0x18a5   :  { %v3606_v24 = vpop.eup %3605 }
0x18a6   :  { %v3608_v2 = vpop.eup %3607  ;;  %v2694_v3 = vmul.f32 %v3606_v24, %v2678_v59 }
0x18a7   :  { %v2693_v6 = vmul.f32 %v3608_v2, %v2677_v60 }
0x18a8   :  { %v2700_v8 = vmul.f32 %v2698_v25, %v2694_v3 }
0x18a9   :  { %v2699_v10 = vmul.f32 %v2698_v25, %v2693_v6 }
0x18aa   :  { %v2706_v12 = vadd.f32 %v2704_v4, %v2700_v8 }
0x18ab   :  { %v2705_v14 = vadd.f32 %v2704_v4, %v2699_v10 }
0x18ad   :  { %v3512_v11 = vpack.c.bf16 %v2706_v12, %v2705_v14 }
0x18af   :  { %3513 = vmatpush3.bf16.msra.mxu0 %v3512_v11 }
0x18b0   :  { %3514 = vmatprep.subr.bf16.mxu0 %v3642_v32 }
0x18b2   :  { %3391 = vmatmul.mubr.msk.f32.vlgmr.msra.gmra.mrb[24].mxu0 %vm427_vm9, %v3058_v44 }
0x18b3   :  { %3516 = vmatpush3.bf16.msra.mxu0 %v3515_v17  ;;  %3401 = vmatprep.mubr.msk.f32.mxu0 %vm3635_vm8, %v3634_v18 }
0x18b4   :  { %3517 = vmatprep.subr.bf16.mxu0 %v3642_v32 }
0x18b7   :  { %3519 = vmatpush3.bf16.msra.mxu0 %v3518_v21 }
0x18b8   :  { %3520 = vmatprep.subr.bf16.mxu0 %v3642_v32 }
0x1985   :  { %v2782_v19 = vpop.f32.mrb[24].mxu0 }
0x1986   :  { %v2787_v31 = vmul.f32 %v2786_v28, %v2782_v19  ;;  %v3392_v33 = vpop.f32.mrb[25].mxu0 }
0x1988   :  { %3402 = vmatmul.mubr.msk.f32.vlgmr.msra.gmra.mrb[26].mxu0 %vm284_vm7, %v2787_v31 }
0x1989   :  { %3522 = vmatpush3.bf16.msra.mxu0 %v3521_v30  ;;  %3412 = vmatprep.mubr.msk.f32.mxu0 %vm3635_vm8, %v3634_v18  ;;  %v3062_v18 = vld [vmem:[%s4303_s21] ss:$0 sm:$0xff] }
0x198a   :  { %3523 = vmatprep.subr.bf16.mxu0 %v3642_v32 }
0x198d   :  { %3525 = vmatpush3.bf16.msra.mxu0 %v3524_v37 }
0x1a5b   :  { %v2868_v39 = vpop.f32.mrb[26].mxu0 }
0x1a5c   :  { %v2869_v40 = vadd.f32 %v3060_v38, %v2868_v39  ;;  %v3403_v41 = vpop.f32.mrb[27].mxu0 }
0x1a5e   :  { %v2872_v43 = vmax.f32 %v2869_v40, 0.0 }
0x1a60   :  { %3413 = vmatmul.mubr.msk.f32.vlgmr.msra.gmra.mrb[28].mxu0 %vm284_vm7, %v2872_v43 }
0x1b33   :  { %v2953_v46 = vpop.f32.mrb[28].mxu0 }
0x1b34   :  { %v2954_v49 = vadd.f32 %v3062_v18, %v2953_v46  ;;  %v3414_v50 = vpop.f32.mrb[29].mxu0 }
0x1b36   :  { %2958 = vst.msk [vmem:[#allocation2] sm:$0x3] %vm2957_vm0, %v2954_v49 }
0x1b37   :  { %3620 = shalt.err (!%p3617_p4)
}
0x1b38   :  { %s3621_s15 = scalar_lea.hbm %s4304_s22, 32 }
0x1b39   :  { %p3622_p5 = scmp.ne.s32.totalorder %s4304_s22, %s3621_s15  ;;  %p3625_p6 = scmp.lt.u32.totalorder %s3621_s15, %s4304_s22 }
0x1b3b   :  { %p3627_p7 = pnand %p3625_p6, %p3622_p5 }
0x1b3d   :  { %3630 = shalt.err (!%p3627_p7)
}
0x1b3e   :  { %2968 = dma.vmem_to_hbm [thread:$0]  %s2966_s13, 32, %s4304_s22, [#allocation3]  }
0x1b3f   :  { %3631 = dma.done.wait [#allocation3], 32  }
0x1b40   :  { %3632 = vsyncadd [#allocation3], 4294967264 }
0x1b41   :  { %2972 = vsyncpa [#allocation3], 1 }

</bundles_post_ra>
